<compile_context>
chip_gen: v7x
topology: tpu7x:2x2x1
jax: 0.10.0
libtpu: 0.0.40
codegen_flags: <defaults>
</compile_context>

<pallas_src>
import functools
import math

import jax
import jax.numpy as jnp
from jax.experimental import pallas as pl
from jax.experimental.pallas import tpu as pltpu

# ---------------- config (small, consistent with the forward) ----------------
VOCAB = 64      # encoder_model.config.vocab_size
HIDDEN = 32     # decoder_model.config.hidden_size
HEADS = 4
HEAD_DIM = HIDDEN // HEADS
FFN = 64
MAX_POS = 16
LN_EPS = 1e-12

# lane-dense output width (>= VOCAB, multiple of 128)
OUT_PAD = 128

# packed-operand slab layout: one (32, 128) f32 array, one DMA.
LANE = 128
SLAB_ROWS = 32
ROW_LN = 0        # rows 0..7: [emb_g, emb_b, attn_g, attn_b, ffn_g, ffn_b, dec_g, dec_b]
ROW_BQKV = 8      # [:, :3*HIDDEN]
ROW_BO = 9        # [:, :HIDDEN]
ROW_B1 = 10       # [:, :FFN]
ROW_B2 = 11       # [:, :HIDDEN]
ROW_DECB = 12     # [:, :HIDDEN]
ROW_OUTB = 13     # [:, :OUT_PAD] (vocab bias, zero-padded past VOCAB)
ROW_POS = 16      # rows 16..16+MAX_POS-1: positional embeddings [:, :HIDDEN]


# ----------------------------- fused Pallas kernel ---------------------------
def _fused_kernel(ids_ref, mask_ref, tok_emb_ref, slab_ref,
                  wqkv_ref, wo_ref, w1_ref, w2_ref, dec_w_ref, out_w_ref,
                  o_ref, *, batch, seq):
    f32 = jnp.float32
    M = batch * seq

    slab = slab_ref[...]                                             # [32, 128]

    def ln_row(i):
        return slab[ROW_LN + i:ROW_LN + i + 1, :HIDDEN]              # [1, H]

    def layer_norm(x, g, b):
        # one-pass stats: two independent reduces (overlap on the XLUs)
        mean = jnp.mean(x, axis=-1, keepdims=True)
        mean_sq = jnp.mean(x * x, axis=-1, keepdims=True)
        var = jnp.maximum(mean_sq - mean * mean, 0.0)
        return (x - mean) * jax.lax.rsqrt(var + LN_EPS) * g + b

    # ---- embeddings: one-hot gather on the MXU + positional add + LN --------
    ids = ids_ref[...]                                               # [M, 1] i32
    vocab_iota = jax.lax.broadcasted_iota(jnp.int32, (M, VOCAB), 1)
    tok_onehot = (ids == vocab_iota).astype(f32)                     # [M, V]
    tok = jnp.dot(tok_onehot, tok_emb_ref[...], preferred_element_type=f32)
    pos = slab[ROW_POS:ROW_POS + seq, :HIDDEN]                       # [S, H]
    emb = (tok.reshape(batch, seq, HIDDEN) + pos).reshape(M, HIDDEN)
    h = layer_norm(emb, ln_row(0), ln_row(1))

    # ---- fused QKV projection: one [M,H] x [H,3H] MXU pass -------------------
    qkv = (jnp.dot(h, wqkv_ref[...], preferred_element_type=f32)
           + slab[ROW_BQKV:ROW_BQKV + 1, :3 * HIDDEN])

    # ---- multi-head self-attention, all batches & heads resident in VMEM ----
    mask = mask_ref[...]                                             # [B, 1, S]
    bias = jnp.broadcast_to((1.0 - mask) * -1e9, (batch, seq, seq))  # hoisted
    scale = 1.0 / math.sqrt(HEAD_DIM)

    # NOTE: a single 'bqhd,bkhd->bhqk' einsum would need a two-batch-dim
    # dot_general (not lowerable by Mosaic); the transpose-free per-head loop
    # below uses only single-batch einsums + leading-only reshapes.
    ctx_heads = []
    for hh in range(HEADS):                                          # unrolled
        q_h = qkv[:, hh * HEAD_DIM:(hh + 1) * HEAD_DIM].reshape(batch, seq, HEAD_DIM)
        k_h = qkv[:, HIDDEN + hh * HEAD_DIM:HIDDEN + (hh + 1) * HEAD_DIM].reshape(
            batch, seq, HEAD_DIM)
        v_h = qkv[:, 2 * HIDDEN + hh * HEAD_DIM:2 * HIDDEN + (hh + 1) * HEAD_DIM].reshape(
            batch, seq, HEAD_DIM)
        s = jnp.einsum("bqd,bkd->bqk", q_h, k_h,
                       preferred_element_type=f32) * scale + bias
        s = s - jnp.max(s, axis=-1, keepdims=True)
        p = jnp.exp(s)
        # divide -> EUP reciprocal (its own VLIW slot)
        p = p * pl.reciprocal(jnp.sum(p, axis=-1, keepdims=True), approx=True)
        ctx_h = jnp.einsum("bqk,bkd->bqd", p, v_h, preferred_element_type=f32)
        ctx_heads.append(ctx_h.reshape(M, HEAD_DIM))
    ctx = jnp.concatenate(ctx_heads, axis=-1)                        # [M, H]

    attn_out = (jnp.dot(ctx, wo_ref[...], preferred_element_type=f32)
                + slab[ROW_BO:ROW_BO + 1, :HIDDEN])
    h = layer_norm(h + attn_out, ln_row(2), ln_row(3))

    # ---- FFN -----------------------------------------------------------------
    f = jnp.dot(h, w1_ref[...], preferred_element_type=f32) + slab[ROW_B1:ROW_B1 + 1, :FFN]
    # TODO(synk): HF BERT's default is the exact erf GELU; tanh approximation used.
    f = jax.nn.gelu(f, approximate=True)
    f = jnp.dot(f, w2_ref[...], preferred_element_type=f32) + slab[ROW_B2:ROW_B2 + 1, :HIDDEN]
    h = layer_norm(h + f, ln_row(4), ln_row(5))                      # last_hidden_state

    # ---- decoder (prediction-head transform) ---------------------------------
    d = (jnp.dot(h, dec_w_ref[...], preferred_element_type=f32)
         + slab[ROW_DECB:ROW_DECB + 1, :HIDDEN])
    d = jax.nn.gelu(d, approximate=True)
    d = layer_norm(d, ln_row(6), ln_row(7))

    # ---- self.linear: hidden -> vocab (padded to 128 lanes -> unmasked vst) --
    logits_pad = (jnp.dot(d, out_w_ref[...], preferred_element_type=f32)
                  + slab[ROW_OUTB:ROW_OUTB + 1, :])                  # [M, 128]

    # confusion_set is None -> limit_with_confusion branch is not taken.
    # TODO(synk): limit_with_confusion needs a Python-dict lookup per source char
    # (host-side data-dependent control flow); no clean Pallas equivalent.
    o_ref[...] = logits_pad.astype(o_ref.dtype)


# ------------------------------ parameters -----------------------------------
def init_params(key):
    def w(k, shape, scale=0.02):
        return (scale * jax.random.normal(k, shape)).astype(jnp.float32)

    keys = jax.random.split(key, 24)
    wq = w(keys[2], (HIDDEN, HIDDEN))
    wk = w(keys[3], (HIDDEN, HIDDEN))
    wv = w(keys[4], (HIDDEN, HIDDEN))

    def ln_g(k):
        return (1.0 + 0.1 * jax.random.normal(k, (1, HIDDEN))).astype(jnp.float32)

    def ln_b(k):
        return w(k, (1, HIDDEN))

    p = {
        # encoder embeddings
        "tok_emb": w(keys[0], (VOCAB, HIDDEN)),
        "pos_emb": w(keys[1], (MAX_POS, HIDDEN)),
        # encoder self-attention (Q/K/V fused once at init)
        "wqkv": jnp.concatenate([wq, wk, wv], axis=1),               # [H, 3H]
        "bqkv": w(keys[5], (1, 3 * HIDDEN)),
        "wo": w(keys[6], (HIDDEN, HIDDEN)), "bo": w(keys[7], (1, HIDDEN)),
        # encoder FFN
        "w1": w(keys[8], (HIDDEN, FFN)), "b1": w(keys[9], (1, FFN)),
        "w2": w(keys[10], (FFN, HIDDEN)), "b2": w(keys[11], (1, HIDDEN)),
        # decoder (prediction-head transform)
        "dec_w": w(keys[12], (HIDDEN, HIDDEN)), "dec_b": w(keys[13], (1, HIDDEN)),
        # self.linear: hidden -> vocab
        "out_w": w(keys[14], (HIDDEN, VOCAB)), "out_b": w(keys[15], (1, VOCAB)),
        # LayerNorm rows: [emb_g, emb_b, attn_g, attn_b, ffn_g, ffn_b, dec_g, dec_b]
        "ln_stack": jnp.concatenate(
            [ln_g(keys[16]), ln_b(keys[17]),
             ln_g(keys[18]), ln_b(keys[19]),
             ln_g(keys[20]), ln_b(keys[21]),
             ln_g(keys[22]), ln_b(keys[23])], axis=0),               # [8, H]
    }

    # ---- pack every tiny operand into one (32, 128) slab (single DMA) -------
    slab = jnp.zeros((SLAB_ROWS, LANE), jnp.float32)
    slab = slab.at[ROW_LN:ROW_LN + 8, :HIDDEN].set(p["ln_stack"])
    slab = slab.at[ROW_BQKV, :3 * HIDDEN].set(p["bqkv"][0])
    slab = slab.at[ROW_BO, :HIDDEN].set(p["bo"][0])
    slab = slab.at[ROW_B1, :FFN].set(p["b1"][0])
    slab = slab.at[ROW_B2, :HIDDEN].set(p["b2"][0])
    slab = slab.at[ROW_DECB, :HIDDEN].set(p["dec_b"][0])
    slab = slab.at[ROW_OUTB, :VOCAB].set(p["out_b"][0])
    slab = slab.at[ROW_POS:ROW_POS + MAX_POS, :HIDDEN].set(p["pos_emb"])
    p["slab"] = slab

    # ---- vocab projection padded to 128 output lanes (lane-dense store) -----
    p["out_w_pad"] = jnp.zeros((HIDDEN, OUT_PAD), jnp.float32).at[:, :VOCAB].set(p["out_w"])
    return p


# ------------------------------- forward pass ---------------------------------
def combine_bert_forward(p, src, src_mask):
    """src: [B, S] int token ids; src_mask: [B, S] (1 = attend, 0 = pad)."""
    B, S = src.shape
    M = B * S
    ids = src.reshape(M, 1).astype(jnp.int32)
    mask = src_mask.astype(jnp.float32).reshape(B, 1, S)

    vmem = pl.BlockSpec(memory_space=pltpu.MemorySpace.VMEM)
    kernel = functools.partial(_fused_kernel, batch=B, seq=S)
    # Gridless, everything VMEM-resident: a few KiB total on all generations.
    # (A ("parallel",) batch grid for v7x's 2nd TC only pays off at larger B*S.)
    logits_pad = pl.pallas_call(
        kernel,
        out_shape=jax.ShapeDtypeStruct((M, OUT_PAD), jnp.float32),
        in_specs=[vmem] * 10,
        out_specs=vmem,
    )(ids, mask, p["tok_emb"], p["slab"],
      p["wqkv"], p["wo"], p["w1"], p["w2"], p["dec_w"], p["out_w_pad"])

    # wrapper-side layout plumbing: drop the pad lanes, restore [B, S, VOCAB]
    return logits_pad[:, :VOCAB].reshape(B, S, VOCAB)


# --------------------------- pure-JAX reference --------------------------------
def reference_forward(p, src, src_mask):
    B, S = src.shape
    ln = p["ln_stack"]

    def layer_norm(x, g, b):
        mean = jnp.mean(x, axis=-1, keepdims=True)
        var = jnp.mean((x - mean) ** 2, axis=-1, keepdims=True)
        return (x - mean) * jax.lax.rsqrt(var + LN_EPS) * g + b

    with jax.default_matmul_precision("float32"):
        h = jnp.take(p["tok_emb"], src, axis=0) + p["pos_emb"][:S][None]
        h = layer_norm(h, ln[0], ln[1])
        qkv = h @ p["wqkv"] + p["bqkv"][0]
        q, k, v = jnp.split(qkv, 3, axis=-1)

        def split_heads(x):
            return x.reshape(B, S, HEADS, HEAD_DIM).transpose(0, 2, 1, 3)

        q, k, v = split_heads(q), split_heads(k), split_heads(v)
        bias = ((1.0 - src_mask) * -1e9)[:, None, None, :]
        s = jnp.einsum("bhqd,bhkd->bhqk", q, k) / math.sqrt(HEAD_DIM) + bias
        a = jax.nn.softmax(s, axis=-1)
        ctx = jnp.einsum("bhqk,bhkd->bhqd", a, v).transpose(0, 2, 1, 3).reshape(B, S, HIDDEN)
        h = layer_norm(h + ctx @ p["wo"] + p["bo"][0], ln[2], ln[3])
        f = jax.nn.gelu(h @ p["w1"] + p["b1"][0], approximate=True)
        h = layer_norm(h + f @ p["w2"] + p["b2"][0], ln[4], ln[5])
        d = jax.nn.gelu(h @ p["dec_w"] + p["dec_b"][0], approximate=True)
        d = layer_norm(d, ln[6], ln[7])
        return d @ p["out_w"] + p["out_b"][0]


# ---------------------------------- main --------------------------------------
if __name__ == "__main__":
    key = jax.random.PRNGKey(0)
    B, S = 2, 8
    k_ids, k_par = jax.random.split(key)

    src = jax.random.randint(k_ids, (B, S), 1, VOCAB, dtype=jnp.int32)
    src = src.at[:, -2:].set(0)                       # pad_token_id = 0
    src_mask = (src != 0).astype(jnp.float32)         # 1 = attend, 0 = pad

    params = init_params(k_par)
    logits = jax.block_until_ready(combine_bert_forward(params, src, src_mask))

    assert logits.shape == (B, S, VOCAB)
    assert bool(jnp.all(jnp.isfinite(logits)))

    ref = reference_forward(params, src, src_mask)
    max_err = float(jnp.max(jnp.abs(logits - ref)))
    assert bool(jnp.allclose(logits, ref, atol=1e-2, rtol=1e-2)), max_err

    print("KERNEL_OK")
</pallas_src>

<mosaic_0001>
module attributes {stable_mosaic.version = 11 : i64} {
  func.func @_fused_kernel(%arg0: memref<16x1xi32, #tpu.memory_space<vmem>>, %arg1: memref<2x1x8xf32, #tpu.memory_space<vmem>>, %arg2: memref<64x32xf32, #tpu.memory_space<vmem>>, %arg3: memref<32x128xf32, #tpu.memory_space<vmem>>, %arg4: memref<32x96xf32, #tpu.memory_space<vmem>>, %arg5: memref<32x32xf32, #tpu.memory_space<vmem>>, %arg6: memref<32x64xf32, #tpu.memory_space<vmem>>, %arg7: memref<64x32xf32, #tpu.memory_space<vmem>>, %arg8: memref<32x32xf32, #tpu.memory_space<vmem>>, %arg9: memref<32x128xf32, #tpu.memory_space<vmem>>, %arg10: memref<16x128xf32, #tpu.memory_space<vmem>>) attributes {dimension_semantics = [], scalar_prefetch = 0 : i64, scratch_operands = 0 : i64, tpu.core_type = #tpu.core_type<tc>} {
    %c0 = arith.constant 0 : index
    %c0_0 = arith.constant 0 : index
    %0 = vector.load %arg3[%c0, %c0_0] : memref<32x128xf32, #tpu.memory_space<vmem>>, vector<32x128xf32>
    %c0_1 = arith.constant 0 : index
    %c0_2 = arith.constant 0 : index
    %1 = vector.load %arg0[%c0_1, %c0_2] : memref<16x1xi32, #tpu.memory_space<vmem>>, vector<16x1xi32>
    %2 = tpu.iota {dimensions = array<i32: 1>} : vector<16x64xi32>
    %3 = vector.broadcast %1 : vector<16x1xi32> to vector<16x64xi32>
    %4 = arith.cmpi eq, %3, %2 : vector<16x64xi32>
    %5 = arith.extui %4 : vector<16x64xi1> to vector<16x64xi32>
    %6 = arith.sitofp %5 : vector<16x64xi32> to vector<16x64xf32>
    %c0_3 = arith.constant 0 : index
    %c0_4 = arith.constant 0 : index
    %7 = vector.load %arg2[%c0_3, %c0_4] : memref<64x32xf32, #tpu.memory_space<vmem>>, vector<64x32xf32>
    %cst = arith.constant dense<0.000000e+00> : vector<16x32xf32>
    %8 = tpu.matmul %6, %7, %cst {dimension_numbers = #tpu.dot_dimension_numbers<[1], [0], [0], [1], [0, 0, 1, 1], [], []>} : vector<16x64xf32>, vector<64x32xf32>, vector<16x32xf32> -> vector<16x32xf32>
    %9 = vector.extract_strided_slice %0 {offsets = [16, 0], sizes = [8, 32], strides = [1, 1]} : vector<32x128xf32> to vector<8x32xf32>
    %10 = vector.shape_cast %8 : vector<16x32xf32> to vector<2x8x32xf32>
    %11 = vector.shape_cast %9 : vector<8x32xf32> to vector<1x8x32xf32>
    %12 = vector.broadcast %11 : vector<1x8x32xf32> to vector<2x8x32xf32>
    %13 = arith.addf %10, %12 : vector<2x8x32xf32>
    %14 = vector.shape_cast %13 : vector<2x8x32xf32> to vector<16x32xf32>
    %15 = vector.extract_strided_slice %0 {offsets = [0, 0], sizes = [1, 32], strides = [1, 1]} : vector<32x128xf32> to vector<1x32xf32>
    %16 = vector.extract_strided_slice %0 {offsets = [1, 0], sizes = [1, 32], strides = [1, 1]} : vector<32x128xf32> to vector<1x32xf32>
    %cst_5 = arith.constant dense<0.000000e+00> : vector<16xf32>
    %17 = vector.multi_reduction <add>, %14, %cst_5 [1] : vector<16x32xf32> to vector<16xf32>
    %18 = vector.shape_cast %17 : vector<16xf32> to vector<16x1xf32>
    %cst_6 = arith.constant 3.200000e+01 : f32
    %19 = vector.broadcast %cst_6 : f32 to vector<16x1xf32>
    %20 = arith.divf %18, %19 : vector<16x1xf32>
    %21 = arith.mulf %14, %14 : vector<16x32xf32>
    %cst_7 = arith.constant dense<0.000000e+00> : vector<16xf32>
    %22 = vector.multi_reduction <add>, %21, %cst_7 [1] : vector<16x32xf32> to vector<16xf32>
    %23 = vector.shape_cast %22 : vector<16xf32> to vector<16x1xf32>
    %cst_8 = arith.constant 3.200000e+01 : f32
    %24 = vector.broadcast %cst_8 : f32 to vector<16x1xf32>
    %25 = arith.divf %23, %24 : vector<16x1xf32>
    %26 = arith.mulf %20, %20 : vector<16x1xf32>
    %27 = arith.subf %25, %26 : vector<16x1xf32>
    %cst_9 = arith.constant 0.000000e+00 : f32
    %28 = vector.broadcast %cst_9 : f32 to vector<16x1xf32>
    %29 = arith.maximumf %27, %28 : vector<16x1xf32>
    %30 = vector.broadcast %20 : vector<16x1xf32> to vector<16x32xf32>
    %31 = arith.subf %14, %30 : vector<16x32xf32>
    %cst_10 = arith.constant 9.99999996E-13 : f32
    %32 = vector.broadcast %cst_10 : f32 to vector<16x1xf32>
    %33 = arith.addf %29, %32 : vector<16x1xf32>
    %34 = math.rsqrt %33 : vector<16x1xf32>
    %35 = vector.broadcast %34 : vector<16x1xf32> to vector<16x32xf32>
    %36 = arith.mulf %31, %35 : vector<16x32xf32>
    %37 = vector.broadcast %15 : vector<1x32xf32> to vector<16x32xf32>
    %38 = arith.mulf %36, %37 : vector<16x32xf32>
    %39 = vector.broadcast %16 : vector<1x32xf32> to vector<16x32xf32>
    %40 = arith.addf %38, %39 : vector<16x32xf32>
    %c0_11 = arith.constant 0 : index
    %c0_12 = arith.constant 0 : index
    %41 = vector.load %arg4[%c0_11, %c0_12] : memref<32x96xf32, #tpu.memory_space<vmem>>, vector<32x96xf32>
    %cst_13 = arith.constant dense<0.000000e+00> : vector<16x96xf32>
    %42 = tpu.matmul %40, %41, %cst_13 {dimension_numbers = #tpu.dot_dimension_numbers<[1], [0], [0], [1], [0, 0, 1, 1], [], []>} : vector<16x32xf32>, vector<32x96xf32>, vector<16x96xf32> -> vector<16x96xf32>
    %43 = vector.extract_strided_slice %0 {offsets = [8, 0], sizes = [1, 96], strides = [1, 1]} : vector<32x128xf32> to vector<1x96xf32>
    %44 = vector.broadcast %43 : vector<1x96xf32> to vector<16x96xf32>
    %45 = arith.addf %42, %44 : vector<16x96xf32>
    %c0_14 = arith.constant 0 : index
    %c0_15 = arith.constant 0 : index
    %c0_16 = arith.constant 0 : index
    %46 = vector.load %arg1[%c0_14, %c0_15, %c0_16] : memref<2x1x8xf32, #tpu.memory_space<vmem>>, vector<2x1x8xf32>
    %cst_17 = arith.constant 1.000000e+00 : f32
    %47 = vector.broadcast %cst_17 : f32 to vector<2x1x8xf32>
    %48 = arith.subf %47, %46 : vector<2x1x8xf32>
    %cst_18 = arith.constant -1.000000e+09 : f32
    %49 = vector.broadcast %cst_18 : f32 to vector<2x1x8xf32>
    %50 = arith.mulf %48, %49 : vector<2x1x8xf32>
    %51 = vector.shape_cast %50 : vector<2x1x8xf32> to vector<2x1x8xf32>
    %52 = vector.broadcast %51 : vector<2x1x8xf32> to vector<2x8x8xf32>
    %53 = vector.extract_strided_slice %45 {offsets = [0, 0], sizes = [16, 8], strides = [1, 1]} : vector<16x96xf32> to vector<16x8xf32>
    %54 = vector.shape_cast %53 : vector<16x8xf32> to vector<2x8x8xf32>
    %55 = vector.extract_strided_slice %45 {offsets = [0, 32], sizes = [16, 8], strides = [1, 1]} : vector<16x96xf32> to vector<16x8xf32>
    %56 = vector.shape_cast %55 : vector<16x8xf32> to vector<2x8x8xf32>
    %57 = vector.extract_strided_slice %45 {offsets = [0, 64], sizes = [16, 8], strides = [1, 1]} : vector<16x96xf32> to vector<16x8xf32>
    %58 = vector.shape_cast %57 : vector<16x8xf32> to vector<2x8x8xf32>
    "tpu.trace_start"() <{level = 10 : i32, message = "bqd,bkd->bqk"}> : () -> ()
    %cst_19 = arith.constant dense<0.000000e+00> : vector<2x8x8xf32>
    %59 = tpu.matmul %54, %56, %cst_19 {dimension_numbers = #tpu.dot_dimension_numbers<[2], [2], [1], [1], [0, 0, 0, 1, 1, 1], [0], [0]>} : vector<2x8x8xf32>, vector<2x8x8xf32>, vector<2x8x8xf32> -> vector<2x8x8xf32>
    "tpu.trace_stop"() : () -> ()
    %cst_20 = arith.constant 0.353553385 : f32
    %60 = vector.broadcast %cst_20 : f32 to vector<2x8x8xf32>
    %61 = arith.mulf %59, %60 : vector<2x8x8xf32>
    %62 = arith.addf %61, %52 : vector<2x8x8xf32>
    %cst_21 = arith.constant dense<0xFF800000> : vector<2x8xf32>
    %63 = vector.multi_reduction <maximumf>, %62, %cst_21 [2] : vector<2x8x8xf32> to vector<2x8xf32>
    %64 = vector.shape_cast %63 : vector<2x8xf32> to vector<2x8x1xf32>
    %65 = vector.broadcast %64 : vector<2x8x1xf32> to vector<2x8x8xf32>
    %66 = arith.subf %62, %65 : vector<2x8x8xf32>
    %67 = math.exp %66 : vector<2x8x8xf32>
    %cst_22 = arith.constant dense<0.000000e+00> : vector<2x8xf32>
    %68 = vector.multi_reduction <add>, %67, %cst_22 [2] : vector<2x8x8xf32> to vector<2x8xf32>
    %69 = vector.shape_cast %68 : vector<2x8xf32> to vector<2x8x1xf32>
    %70 = tpu.reciprocal %69 {approx = true} : vector<2x8x1xf32> -> vector<2x8x1xf32>
    %71 = vector.broadcast %70 : vector<2x8x1xf32> to vector<2x8x8xf32>
    %72 = arith.mulf %67, %71 : vector<2x8x8xf32>
    "tpu.trace_start"() <{level = 10 : i32, message = "bqk,bkd->bqd"}> : () -> ()
    %cst_23 = arith.constant dense<0.000000e+00> : vector<2x8x8xf32>
    %73 = tpu.matmul %72, %58, %cst_23 {dimension_numbers = #tpu.dot_dimension_numbers<[2], [1], [1], [2], [0, 0, 0, 1, 1, 2], [0], [0]>} : vector<2x8x8xf32>, vector<2x8x8xf32>, vector<2x8x8xf32> -> vector<2x8x8xf32>
    "tpu.trace_stop"() : () -> ()
    %74 = vector.shape_cast %73 : vector<2x8x8xf32> to vector<16x8xf32>
    %75 = vector.extract_strided_slice %45 {offsets = [0, 8], sizes = [16, 8], strides = [1, 1]} : vector<16x96xf32> to vector<16x8xf32>
    %76 = vector.shape_cast %75 : vector<16x8xf32> to vector<2x8x8xf32>
    %77 = vector.extract_strided_slice %45 {offsets = [0, 40], sizes = [16, 8], strides = [1, 1]} : vector<16x96xf32> to vector<16x8xf32>
    %78 = vector.shape_cast %77 : vector<16x8xf32> to vector<2x8x8xf32>
    %79 = vector.extract_strided_slice %45 {offsets = [0, 72], sizes = [16, 8], strides = [1, 1]} : vector<16x96xf32> to vector<16x8xf32>
    %80 = vector.shape_cast %79 : vector<16x8xf32> to vector<2x8x8xf32>
    "tpu.trace_start"() <{level = 10 : i32, message = "bqd,bkd->bqk"}> : () -> ()
    %cst_24 = arith.constant dense<0.000000e+00> : vector<2x8x8xf32>
    %81 = tpu.matmul %76, %78, %cst_24 {dimension_numbers = #tpu.dot_dimension_numbers<[2], [2], [1], [1], [0, 0, 0, 1, 1, 1], [0], [0]>} : vector<2x8x8xf32>, vector<2x8x8xf32>, vector<2x8x8xf32> -> vector<2x8x8xf32>
    "tpu.trace_stop"() : () -> ()
    %cst_25 = arith.constant 0.353553385 : f32
    %82 = vector.broadcast %cst_25 : f32 to vector<2x8x8xf32>
    %83 = arith.mulf %81, %82 : vector<2x8x8xf32>
    %84 = arith.addf %83, %52 : vector<2x8x8xf32>
    %cst_26 = arith.constant dense<0xFF800000> : vector<2x8xf32>
    %85 = vector.multi_reduction <maximumf>, %84, %cst_26 [2] : vector<2x8x8xf32> to vector<2x8xf32>
    %86 = vector.shape_cast %85 : vector<2x8xf32> to vector<2x8x1xf32>
    %87 = vector.broadcast %86 : vector<2x8x1xf32> to vector<2x8x8xf32>
    %88 = arith.subf %84, %87 : vector<2x8x8xf32>
    %89 = math.exp %88 : vector<2x8x8xf32>
    %cst_27 = arith.constant dense<0.000000e+00> : vector<2x8xf32>
    %90 = vector.multi_reduction <add>, %89, %cst_27 [2] : vector<2x8x8xf32> to vector<2x8xf32>
    %91 = vector.shape_cast %90 : vector<2x8xf32> to vector<2x8x1xf32>
    %92 = tpu.reciprocal %91 {approx = true} : vector<2x8x1xf32> -> vector<2x8x1xf32>
    %93 = vector.broadcast %92 : vector<2x8x1xf32> to vector<2x8x8xf32>
    %94 = arith.mulf %89, %93 : vector<2x8x8xf32>
    "tpu.trace_start"() <{level = 10 : i32, message = "bqk,bkd->bqd"}> : () -> ()
    %cst_28 = arith.constant dense<0.000000e+00> : vector<2x8x8xf32>
    %95 = tpu.matmul %94, %80, %cst_28 {dimension_numbers = #tpu.dot_dimension_numbers<[2], [1], [1], [2], [0, 0, 0, 1, 1, 2], [0], [0]>} : vector<2x8x8xf32>, vector<2x8x8xf32>, vector<2x8x8xf32> -> vector<2x8x8xf32>
    "tpu.trace_stop"() : () -> ()
    %96 = vector.shape_cast %95 : vector<2x8x8xf32> to vector<16x8xf32>
    %97 = vector.extract_strided_slice %45 {offsets = [0, 16], sizes = [16, 8], strides = [1, 1]} : vector<16x96xf32> to vector<16x8xf32>
    %98 = vector.shape_cast %97 : vector<16x8xf32> to vector<2x8x8xf32>
    %99 = vector.extract_strided_slice %45 {offsets = [0, 48], sizes = [16, 8], strides = [1, 1]} : vector<16x96xf32> to vector<16x8xf32>
    %100 = vector.shape_cast %99 : vector<16x8xf32> to vector<2x8x8xf32>
    %101 = vector.extract_strided_slice %45 {offsets = [0, 80], sizes = [16, 8], strides = [1, 1]} : vector<16x96xf32> to vector<16x8xf32>
    %102 = vector.shape_cast %101 : vector<16x8xf32> to vector<2x8x8xf32>
    "tpu.trace_start"() <{level = 10 : i32, message = "bqd,bkd->bqk"}> : () -> ()
    %cst_29 = arith.constant dense<0.000000e+00> : vector<2x8x8xf32>
    %103 = tpu.matmul %98, %100, %cst_29 {dimension_numbers = #tpu.dot_dimension_numbers<[2], [2], [1], [1], [0, 0, 0, 1, 1, 1], [0], [0]>} : vector<2x8x8xf32>, vector<2x8x8xf32>, vector<2x8x8xf32> -> vector<2x8x8xf32>
    "tpu.trace_stop"() : () -> ()
    %cst_30 = arith.constant 0.353553385 : f32
    %104 = vector.broadcast %cst_30 : f32 to vector<2x8x8xf32>
    %105 = arith.mulf %103, %104 : vector<2x8x8xf32>
    %106 = arith.addf %105, %52 : vector<2x8x8xf32>
    %cst_31 = arith.constant dense<0xFF800000> : vector<2x8xf32>
    %107 = vector.multi_reduction <maximumf>, %106, %cst_31 [2] : vector<2x8x8xf32> to vector<2x8xf32>
    %108 = vector.shape_cast %107 : vector<2x8xf32> to vector<2x8x1xf32>
    %109 = vector.broadcast %108 : vector<2x8x1xf32> to vector<2x8x8xf32>
    %110 = arith.subf %106, %109 : vector<2x8x8xf32>
    %111 = math.exp %110 : vector<2x8x8xf32>
    %cst_32 = arith.constant dense<0.000000e+00> : vector<2x8xf32>
    %112 = vector.multi_reduction <add>, %111, %cst_32 [2] : vector<2x8x8xf32> to vector<2x8xf32>
    %113 = vector.shape_cast %112 : vector<2x8xf32> to vector<2x8x1xf32>
    %114 = tpu.reciprocal %113 {approx = true} : vector<2x8x1xf32> -> vector<2x8x1xf32>
    %115 = vector.broadcast %114 : vector<2x8x1xf32> to vector<2x8x8xf32>
    %116 = arith.mulf %111, %115 : vector<2x8x8xf32>
    "tpu.trace_start"() <{level = 10 : i32, message = "bqk,bkd->bqd"}> : () -> ()
    %cst_33 = arith.constant dense<0.000000e+00> : vector<2x8x8xf32>
    %117 = tpu.matmul %116, %102, %cst_33 {dimension_numbers = #tpu.dot_dimension_numbers<[2], [1], [1], [2], [0, 0, 0, 1, 1, 2], [0], [0]>} : vector<2x8x8xf32>, vector<2x8x8xf32>, vector<2x8x8xf32> -> vector<2x8x8xf32>
    "tpu.trace_stop"() : () -> ()
    %118 = vector.shape_cast %117 : vector<2x8x8xf32> to vector<16x8xf32>
    %119 = vector.extract_strided_slice %45 {offsets = [0, 24], sizes = [16, 8], strides = [1, 1]} : vector<16x96xf32> to vector<16x8xf32>
    %120 = vector.shape_cast %119 : vector<16x8xf32> to vector<2x8x8xf32>
    %121 = vector.extract_strided_slice %45 {offsets = [0, 56], sizes = [16, 8], strides = [1, 1]} : vector<16x96xf32> to vector<16x8xf32>
    %122 = vector.shape_cast %121 : vector<16x8xf32> to vector<2x8x8xf32>
    %123 = vector.extract_strided_slice %45 {offsets = [0, 88], sizes = [16, 8], strides = [1, 1]} : vector<16x96xf32> to vector<16x8xf32>
    %124 = vector.shape_cast %123 : vector<16x8xf32> to vector<2x8x8xf32>
    "tpu.trace_start"() <{level = 10 : i32, message = "bqd,bkd->bqk"}> : () -> ()
    %cst_34 = arith.constant dense<0.000000e+00> : vector<2x8x8xf32>
    %125 = tpu.matmul %120, %122, %cst_34 {dimension_numbers = #tpu.dot_dimension_numbers<[2], [2], [1], [1], [0, 0, 0, 1, 1, 1], [0], [0]>} : vector<2x8x8xf32>, vector<2x8x8xf32>, vector<2x8x8xf32> -> vector<2x8x8xf32>
    "tpu.trace_stop"() : () -> ()
    %cst_35 = arith.constant 0.353553385 : f32
    %126 = vector.broadcast %cst_35 : f32 to vector<2x8x8xf32>
    %127 = arith.mulf %125, %126 : vector<2x8x8xf32>
    %128 = arith.addf %127, %52 : vector<2x8x8xf32>
    %cst_36 = arith.constant dense<0xFF800000> : vector<2x8xf32>
    %129 = vector.multi_reduction <maximumf>, %128, %cst_36 [2] : vector<2x8x8xf32> to vector<2x8xf32>
    %130 = vector.shape_cast %129 : vector<2x8xf32> to vector<2x8x1xf32>
    %131 = vector.broadcast %130 : vector<2x8x1xf32> to vector<2x8x8xf32>
    %132 = arith.subf %128, %131 : vector<2x8x8xf32>
    %133 = math.exp %132 : vector<2x8x8xf32>
    %cst_37 = arith.constant dense<0.000000e+00> : vector<2x8xf32>
    %134 = vector.multi_reduction <add>, %133, %cst_37 [2] : vector<2x8x8xf32> to vector<2x8xf32>
    %135 = vector.shape_cast %134 : vector<2x8xf32> to vector<2x8x1xf32>
    %136 = tpu.reciprocal %135 {approx = true} : vector<2x8x1xf32> -> vector<2x8x1xf32>
    %137 = vector.broadcast %136 : vector<2x8x1xf32> to vector<2x8x8xf32>
    %138 = arith.mulf %133, %137 : vector<2x8x8xf32>
    "tpu.trace_start"() <{level = 10 : i32, message = "bqk,bkd->bqd"}> : () -> ()
    %cst_38 = arith.constant dense<0.000000e+00> : vector<2x8x8xf32>
    %139 = tpu.matmul %138, %124, %cst_38 {dimension_numbers = #tpu.dot_dimension_numbers<[2], [1], [1], [2], [0, 0, 0, 1, 1, 2], [0], [0]>} : vector<2x8x8xf32>, vector<2x8x8xf32>, vector<2x8x8xf32> -> vector<2x8x8xf32>
    "tpu.trace_stop"() : () -> ()
    %140 = vector.shape_cast %139 : vector<2x8x8xf32> to vector<16x8xf32>
    %141 = tpu.concatenate %74, %96, %118, %140 in 1 : vector<16x8xf32>, vector<16x8xf32>, vector<16x8xf32>, vector<16x8xf32> -> vector<16x32xf32>
    %c0_39 = arith.constant 0 : index
    %c0_40 = arith.constant 0 : index
    %142 = vector.load %arg5[%c0_39, %c0_40] : memref<32x32xf32, #tpu.memory_space<vmem>>, vector<32x32xf32>
    %cst_41 = arith.constant dense<0.000000e+00> : vector<16x32xf32>
    %143 = tpu.matmul %141, %142, %cst_41 {dimension_numbers = #tpu.dot_dimension_numbers<[1], [0], [0], [1], [0, 0, 1, 1], [], []>} : vector<16x32xf32>, vector<32x32xf32>, vector<16x32xf32> -> vector<16x32xf32>
    %144 = vector.extract_strided_slice %0 {offsets = [9, 0], sizes = [1, 32], strides = [1, 1]} : vector<32x128xf32> to vector<1x32xf32>
    %145 = vector.broadcast %144 : vector<1x32xf32> to vector<16x32xf32>
    %146 = arith.addf %143, %145 : vector<16x32xf32>
    %147 = arith.addf %40, %146 : vector<16x32xf32>
    %148 = vector.extract_strided_slice %0 {offsets = [2, 0], sizes = [1, 32], strides = [1, 1]} : vector<32x128xf32> to vector<1x32xf32>
    %149 = vector.extract_strided_slice %0 {offsets = [3, 0], sizes = [1, 32], strides = [1, 1]} : vector<32x128xf32> to vector<1x32xf32>
    %cst_42 = arith.constant dense<0.000000e+00> : vector<16xf32>
    %150 = vector.multi_reduction <add>, %147, %cst_42 [1] : vector<16x32xf32> to vector<16xf32>
    %151 = vector.shape_cast %150 : vector<16xf32> to vector<16x1xf32>
    %cst_43 = arith.constant 3.200000e+01 : f32
    %152 = vector.broadcast %cst_43 : f32 to vector<16x1xf32>
    %153 = arith.divf %151, %152 : vector<16x1xf32>
    %154 = arith.mulf %147, %147 : vector<16x32xf32>
    %cst_44 = arith.constant dense<0.000000e+00> : vector<16xf32>
    %155 = vector.multi_reduction <add>, %154, %cst_44 [1] : vector<16x32xf32> to vector<16xf32>
    %156 = vector.shape_cast %155 : vector<16xf32> to vector<16x1xf32>
    %cst_45 = arith.constant 3.200000e+01 : f32
    %157 = vector.broadcast %cst_45 : f32 to vector<16x1xf32>
    %158 = arith.divf %156, %157 : vector<16x1xf32>
    %159 = arith.mulf %153, %153 : vector<16x1xf32>
    %160 = arith.subf %158, %159 : vector<16x1xf32>
    %cst_46 = arith.constant 0.000000e+00 : f32
    %161 = vector.broadcast %cst_46 : f32 to vector<16x1xf32>
    %162 = arith.maximumf %160, %161 : vector<16x1xf32>
    %163 = vector.broadcast %153 : vector<16x1xf32> to vector<16x32xf32>
    %164 = arith.subf %147, %163 : vector<16x32xf32>
    %cst_47 = arith.constant 9.99999996E-13 : f32
    %165 = vector.broadcast %cst_47 : f32 to vector<16x1xf32>
    %166 = arith.addf %162, %165 : vector<16x1xf32>
    %167 = math.rsqrt %166 : vector<16x1xf32>
    %168 = vector.broadcast %167 : vector<16x1xf32> to vector<16x32xf32>
    %169 = arith.mulf %164, %168 : vector<16x32xf32>
    %170 = vector.broadcast %148 : vector<1x32xf32> to vector<16x32xf32>
    %171 = arith.mulf %169, %170 : vector<16x32xf32>
    %172 = vector.broadcast %149 : vector<1x32xf32> to vector<16x32xf32>
    %173 = arith.addf %171, %172 : vector<16x32xf32>
    %c0_48 = arith.constant 0 : index
    %c0_49 = arith.constant 0 : index
    %174 = vector.load %arg6[%c0_48, %c0_49] : memref<32x64xf32, #tpu.memory_space<vmem>>, vector<32x64xf32>
    %cst_50 = arith.constant dense<0.000000e+00> : vector<16x64xf32>
    %175 = tpu.matmul %173, %174, %cst_50 {dimension_numbers = #tpu.dot_dimension_numbers<[1], [0], [0], [1], [0, 0, 1, 1], [], []>} : vector<16x32xf32>, vector<32x64xf32>, vector<16x64xf32> -> vector<16x64xf32>
    %176 = vector.extract_strided_slice %0 {offsets = [10, 0], sizes = [1, 64], strides = [1, 1]} : vector<32x128xf32> to vector<1x64xf32>
    %177 = vector.broadcast %176 : vector<1x64xf32> to vector<16x64xf32>
    %178 = arith.addf %175, %177 : vector<16x64xf32>
    %179 = arith.mulf %178, %178 : vector<16x64xf32>
    %180 = arith.mulf %178, %179 : vector<16x64xf32>
    %cst_51 = arith.constant 4.471500e-02 : f32
    %181 = vector.broadcast %cst_51 : f32 to vector<16x64xf32>
    %182 = arith.mulf %181, %180 : vector<16x64xf32>
    %183 = arith.addf %178, %182 : vector<16x64xf32>
    %cst_52 = arith.constant 0.797884583 : f32
    %184 = vector.broadcast %cst_52 : f32 to vector<16x64xf32>
    %185 = arith.mulf %184, %183 : vector<16x64xf32>
    %186 = math.tanh %185 : vector<16x64xf32>
    %cst_53 = arith.constant 1.000000e+00 : f32
    %187 = vector.broadcast %cst_53 : f32 to vector<16x64xf32>
    %188 = arith.addf %187, %186 : vector<16x64xf32>
    %cst_54 = arith.constant 5.000000e-01 : f32
    %189 = vector.broadcast %cst_54 : f32 to vector<16x64xf32>
    %190 = arith.mulf %189, %188 : vector<16x64xf32>
    %191 = arith.mulf %178, %190 : vector<16x64xf32>
    %c0_55 = arith.constant 0 : index
    %c0_56 = arith.constant 0 : index
    %192 = vector.load %arg7[%c0_55, %c0_56] : memref<64x32xf32, #tpu.memory_space<vmem>>, vector<64x32xf32>
    %cst_57 = arith.constant dense<0.000000e+00> : vector<16x32xf32>
    %193 = tpu.matmul %191, %192, %cst_57 {dimension_numbers = #tpu.dot_dimension_numbers<[1], [0], [0], [1], [0, 0, 1, 1], [], []>} : vector<16x64xf32>, vector<64x32xf32>, vector<16x32xf32> -> vector<16x32xf32>
    %194 = vector.extract_strided_slice %0 {offsets = [11, 0], sizes = [1, 32], strides = [1, 1]} : vector<32x128xf32> to vector<1x32xf32>
    %195 = vector.broadcast %194 : vector<1x32xf32> to vector<16x32xf32>
    %196 = arith.addf %193, %195 : vector<16x32xf32>
    %197 = arith.addf %173, %196 : vector<16x32xf32>
    %198 = vector.extract_strided_slice %0 {offsets = [4, 0], sizes = [1, 32], strides = [1, 1]} : vector<32x128xf32> to vector<1x32xf32>
    %199 = vector.extract_strided_slice %0 {offsets = [5, 0], sizes = [1, 32], strides = [1, 1]} : vector<32x128xf32> to vector<1x32xf32>
    %cst_58 = arith.constant dense<0.000000e+00> : vector<16xf32>
    %200 = vector.multi_reduction <add>, %197, %cst_58 [1] : vector<16x32xf32> to vector<16xf32>
    %201 = vector.shape_cast %200 : vector<16xf32> to vector<16x1xf32>
    %cst_59 = arith.constant 3.200000e+01 : f32
    %202 = vector.broadcast %cst_59 : f32 to vector<16x1xf32>
    %203 = arith.divf %201, %202 : vector<16x1xf32>
    %204 = arith.mulf %197, %197 : vector<16x32xf32>
    %cst_60 = arith.constant dense<0.000000e+00> : vector<16xf32>
    %205 = vector.multi_reduction <add>, %204, %cst_60 [1] : vector<16x32xf32> to vector<16xf32>
    %206 = vector.shape_cast %205 : vector<16xf32> to vector<16x1xf32>
    %cst_61 = arith.constant 3.200000e+01 : f32
    %207 = vector.broadcast %cst_61 : f32 to vector<16x1xf32>
    %208 = arith.divf %206, %207 : vector<16x1xf32>
    %209 = arith.mulf %203, %203 : vector<16x1xf32>
    %210 = arith.subf %208, %209 : vector<16x1xf32>
    %cst_62 = arith.constant 0.000000e+00 : f32
    %211 = vector.broadcast %cst_62 : f32 to vector<16x1xf32>
    %212 = arith.maximumf %210, %211 : vector<16x1xf32>
    %213 = vector.broadcast %203 : vector<16x1xf32> to vector<16x32xf32>
    %214 = arith.subf %197, %213 : vector<16x32xf32>
    %cst_63 = arith.constant 9.99999996E-13 : f32
    %215 = vector.broadcast %cst_63 : f32 to vector<16x1xf32>
    %216 = arith.addf %212, %215 : vector<16x1xf32>
    %217 = math.rsqrt %216 : vector<16x1xf32>
    %218 = vector.broadcast %217 : vector<16x1xf32> to vector<16x32xf32>
    %219 = arith.mulf %214, %218 : vector<16x32xf32>
    %220 = vector.broadcast %198 : vector<1x32xf32> to vector<16x32xf32>
    %221 = arith.mulf %219, %220 : vector<16x32xf32>
    %222 = vector.broadcast %199 : vector<1x32xf32> to vector<16x32xf32>
    %223 = arith.addf %221, %222 : vector<16x32xf32>
    %c0_64 = arith.constant 0 : index
    %c0_65 = arith.constant 0 : index
    %224 = vector.load %arg8[%c0_64, %c0_65] : memref<32x32xf32, #tpu.memory_space<vmem>>, vector<32x32xf32>
    %cst_66 = arith.constant dense<0.000000e+00> : vector<16x32xf32>
    %225 = tpu.matmul %223, %224, %cst_66 {dimension_numbers = #tpu.dot_dimension_numbers<[1], [0], [0], [1], [0, 0, 1, 1], [], []>} : vector<16x32xf32>, vector<32x32xf32>, vector<16x32xf32> -> vector<16x32xf32>
    %226 = vector.extract_strided_slice %0 {offsets = [12, 0], sizes = [1, 32], strides = [1, 1]} : vector<32x128xf32> to vector<1x32xf32>
    %227 = vector.broadcast %226 : vector<1x32xf32> to vector<16x32xf32>
    %228 = arith.addf %225, %227 : vector<16x32xf32>
    %229 = arith.mulf %228, %228 : vector<16x32xf32>
    %230 = arith.mulf %228, %229 : vector<16x32xf32>
    %cst_67 = arith.constant 4.471500e-02 : f32
    %231 = vector.broadcast %cst_67 : f32 to vector<16x32xf32>
    %232 = arith.mulf %231, %230 : vector<16x32xf32>
    %233 = arith.addf %228, %232 : vector<16x32xf32>
    %cst_68 = arith.constant 0.797884583 : f32
    %234 = vector.broadcast %cst_68 : f32 to vector<16x32xf32>
    %235 = arith.mulf %234, %233 : vector<16x32xf32>
    %236 = math.tanh %235 : vector<16x32xf32>
    %cst_69 = arith.constant 1.000000e+00 : f32
    %237 = vector.broadcast %cst_69 : f32 to vector<16x32xf32>
    %238 = arith.addf %237, %236 : vector<16x32xf32>
    %cst_70 = arith.constant 5.000000e-01 : f32
    %239 = vector.broadcast %cst_70 : f32 to vector<16x32xf32>
    %240 = arith.mulf %239, %238 : vector<16x32xf32>
    %241 = arith.mulf %228, %240 : vector<16x32xf32>
    %242 = vector.extract_strided_slice %0 {offsets = [6, 0], sizes = [1, 32], strides = [1, 1]} : vector<32x128xf32> to vector<1x32xf32>
    %243 = vector.extract_strided_slice %0 {offsets = [7, 0], sizes = [1, 32], strides = [1, 1]} : vector<32x128xf32> to vector<1x32xf32>
    %cst_71 = arith.constant dense<0.000000e+00> : vector<16xf32>
    %244 = vector.multi_reduction <add>, %241, %cst_71 [1] : vector<16x32xf32> to vector<16xf32>
    %245 = vector.shape_cast %244 : vector<16xf32> to vector<16x1xf32>
    %cst_72 = arith.constant 3.200000e+01 : f32
    %246 = vector.broadcast %cst_72 : f32 to vector<16x1xf32>
    %247 = arith.divf %245, %246 : vector<16x1xf32>
    %248 = arith.mulf %241, %241 : vector<16x32xf32>
    %cst_73 = arith.constant dense<0.000000e+00> : vector<16xf32>
    %249 = vector.multi_reduction <add>, %248, %cst_73 [1] : vector<16x32xf32> to vector<16xf32>
    %250 = vector.shape_cast %249 : vector<16xf32> to vector<16x1xf32>
    %cst_74 = arith.constant 3.200000e+01 : f32
    %251 = vector.broadcast %cst_74 : f32 to vector<16x1xf32>
    %252 = arith.divf %250, %251 : vector<16x1xf32>
    %253 = arith.mulf %247, %247 : vector<16x1xf32>
    %254 = arith.subf %252, %253 : vector<16x1xf32>
    %cst_75 = arith.constant 0.000000e+00 : f32
    %255 = vector.broadcast %cst_75 : f32 to vector<16x1xf32>
    %256 = arith.maximumf %254, %255 : vector<16x1xf32>
    %257 = vector.broadcast %247 : vector<16x1xf32> to vector<16x32xf32>
    %258 = arith.subf %241, %257 : vector<16x32xf32>
    %cst_76 = arith.constant 9.99999996E-13 : f32
    %259 = vector.broadcast %cst_76 : f32 to vector<16x1xf32>
    %260 = arith.addf %256, %259 : vector<16x1xf32>
    %261 = math.rsqrt %260 : vector<16x1xf32>
    %262 = vector.broadcast %261 : vector<16x1xf32> to vector<16x32xf32>
    %263 = arith.mulf %258, %262 : vector<16x32xf32>
    %264 = vector.broadcast %242 : vector<1x32xf32> to vector<16x32xf32>
    %265 = arith.mulf %263, %264 : vector<16x32xf32>
    %266 = vector.broadcast %243 : vector<1x32xf32> to vector<16x32xf32>
    %267 = arith.addf %265, %266 : vector<16x32xf32>
    %c0_77 = arith.constant 0 : index
    %c0_78 = arith.constant 0 : index
    %268 = vector.load %arg9[%c0_77, %c0_78] : memref<32x128xf32, #tpu.memory_space<vmem>>, vector<32x128xf32>
    %cst_79 = arith.constant dense<0.000000e+00> : vector<16x128xf32>
    %269 = tpu.matmul %267, %268, %cst_79 {dimension_numbers = #tpu.dot_dimension_numbers<[1], [0], [0], [1], [0, 0, 1, 1], [], []>} : vector<16x32xf32>, vector<32x128xf32>, vector<16x128xf32> -> vector<16x128xf32>
    %270 = vector.extract_strided_slice %0 {offsets = [13, 0], sizes = [1, 128], strides = [1, 1]} : vector<32x128xf32> to vector<1x128xf32>
    %271 = vector.broadcast %270 : vector<1x128xf32> to vector<16x128xf32>
    %272 = arith.addf %269, %271 : vector<16x128xf32>
    %c0_80 = arith.constant 0 : index
    %c0_81 = arith.constant 0 : index
    %273 = vector.load %arg10[%c0_80, %c0_81] : memref<16x128xf32, #tpu.memory_space<vmem>>, vector<16x128xf32>
    tpu.vector_store %arg10[%c0_80, %c0_81], %272 {strides = array<i32>} : memref<16x128xf32, #tpu.memory_space<vmem>>, vector<16x128xf32>,
    return
  }
}

</mosaic_0001>

<bundles_post_ra>
// kernel: tpu_custom_call.1
= control target key start
LH: loop header
LB: loop body
LE: loop exit
PB: predicated region body
PF: predicated region fallthrough
CT: control target
= control target key end

     0   :  { %15 = vsyncpa [#allocation3], 0  ;;  %s3267_s0 = inlined_call_operand.vmem [shape: s32[16,1], index: 0, kind: input, shape index: {}]   ;;  %s3268_s1 = inlined_call_operand.hbm [shape: f32[2,1,8], index: 1, kind: input, shape index: {}]   ;;  %s3269_s2 = inlined_call_operand.vmem [shape: f32[64,32], index: 2, kind: input, shape index: {}]   ;;  %s3270_s3 = inlined_call_operand.vmem [shape: f32[32,128], index: 3, kind: input, shape index: {}]   ;;  %s3271_s4 = inlined_call_operand.vmem [shape: f32[32,96], index: 4, kind: input, shape index: {}]   ;;  %s3272_s5 = inlined_call_operand.vmem [shape: f32[32,32], index: 5, kind: input, shape index: {}]   ;;  %s3273_s6 = inlined_call_operand.vmem [shape: f32[32,64], index: 6, kind: input, shape index: {}]   ;;  %s3274_s7 = inlined_call_operand.vmem [shape: f32[64,32], index: 7, kind: input, shape index: {}]   ;;  %s3275_s8 = inlined_call_operand.vmem [shape: f32[32,32], index: 8, kind: input, shape index: {}]   ;;  %s3276_s9 = inlined_call_operand.vmem [shape: f32[32,128], index: 9, kind: input, shape index: {}]   ;;  %s3277_s10 = inlined_call_operand.hbm [shape: f32[16,128], index: 10, kind: output, shape index: {}]  }
   0x1   :  { %16 = vsyncpa [#allocation4], 0  ;;  %s2816_s13 = smov [#allocation2]   ;;  %s2768_s17 = scalar_lea.hbm %s3268_s1, 32 }
   0x2   :  { %s24_s14 = sshll.u32 %s2816_s13, 4  ;;  %p2769_p0 = scmp.ne.s32.totalorder %s3268_s1, %s2768_s17  ;;  %s25_s14 = int_to_ptr.vmem [resolvable:$true] %s24_s14 }
   0x3   :  { %p2772_p1 = scmp.lt.u32.totalorder %s2768_s17, %s3268_s1 }
   0x5   :  { %p2774_p2 = pnand %p2772_p1, %p2769_p0 }
   0x7   :  { %2777 = shalt.err (!%p2774_p2)
}
   0x8   :  { %s2778_s22 = scalar_lea.vmem %s25_s14, 32  ;;  %p2783_p4 = scmp.lt.s32.totalorder %s25_s14, %s25_s14 }
   0x9   :  { %p2779_p3 = scmp.ne.s32.totalorder %s25_s14, %s2778_s22  ;;  %p2784_p5 = scmp.lt.s32.totalorder %s2778_s22, %s2778_s22 }
   0xb   :  { %p2785_p6 = por %p2784_p5, %p2783_p4 }
   0xd   :  { %p2786_p7 = pnand %p2785_p6, %p2779_p3 }
   0xf   :  { %2789 = shalt.err (!%p2786_p7)
}
  0x10   :  { %s2817_s23 = smov 16   ;;  %s2818_s24 = smov 1  }
  0x11   :  { %30 = dma.hbm_to_vmem [thread:$0]  %s3268_s1, 32, %s25_s14, [#allocation3], %s2817_s23, %s2817_s23, %s2818_s24  }
  0x12   :  { %2812 = dma.done.wait [#allocation3], 32  }
  0x13   :  { %2813 = vsyncadd [#allocation3], 4294967264  ;;  %v2819_v0 = vmov 0   ;;  %v53_v1 = vld [vmem:[%s3267_s0] sm:$0xff]  ;;  %v70_v3 = vld [vmem:[%s3269_s2 + $0x8] sm:$0xff]  ;;  %v2820_v15 = vmov 0.0   ;;  %v55_v16 = vlaneseq }
  0x14   :  { %2709 = vset.pattern.permute.xlu0 %v2819_v0  ;;  %v69_v2 = vld [vmem:[%s3269_s2] sm:$0xff]  ;;  %v71_v4 = vld [vmem:[%s3269_s2 + $0x10] sm:$0xff]  ;;  %v72_v5 = vld [vmem:[%s3269_s2 + $0x18] sm:$0xff]  ;;  %vm77_vm0 = vcmask 523264   ;;  %vm161_vm3 = vcmask 261120   ;;  %vm2821_vm4 = vmmov 0  }
  0x15   :  { %58 = vperm.xlu0 %2709, %v53_v1   ;;  %v54_v6 = vld [vmem:[%s3267_s0 + $0x8] sm:$0xff]  ;;  %v2616_v7 = vpack.c.bf16 %v70_v3, %v69_v2  ;;  %v2620_v8 = vpack.c.bf16 %v72_v5, %v71_v4  ;;  %v73_v9 = vld [vmem:[%s3269_s2 + $0x20] sm:$0xff]  ;;  %v75_v12 = vld [vmem:[%s3269_s2 + $0x30] sm:$0xff]  ;;  %v56_v17 = vand.u32 127, %v55_v16  ;;  %v2961_v55 = vshrl.u32 %v55_v16, 7  ;;  %s2822_s17 = smov 96  }
  0x16   :  { %v74_v10 = vld [vmem:[%s3269_s2 + $0x28] sm:$0xff]  ;;  %v76_v13 = vld [vmem:[%s3269_s2 + $0x38] sm:$0xff]  ;;  %v52_v22 = vld [vmem:[%s3270_s3 + $0x10] sm:$0xff]  ;;  %vm317_vm5 = vcmask 64512   ;;  %s2823_s18 = smov 64   ;;  %s2824_s19 = smov 88  }
  0x17   :  { %2617 = vmatprep.subr.bf16.mxu0 %v2616_v7  ;;  %v2624_v11 = vpack.c.bf16 %v74_v10, %v73_v9  ;;  %v2628_v14 = vpack.c.bf16 %v76_v13, %v75_v12  ;;  %v207_v33 = vld [vmem:[%s3271_s4] sm:$0xff]  ;;  %v208_v34 = vld [vmem:[%s3271_s4 + $0x8] sm:$0xff]  ;;  %v209_v36 = vld [vmem:[%s3271_s4 + $0x10] sm:$0xff]  ;;  %v197_v56 = vsub.s32 0, %v2961_v55  ;;  %v203_v58 = vsub.s32 1, %v2961_v55  ;;  %s2825_s20 = smov 120  }
  0x18   :  { %2619 = vmatpush3.bf16.msra.mxu0 %v2616_v7  ;;  %v2632_v35 = vpack.c.bf16 %v208_v34, %v207_v33  ;;  %v210_v37 = vld [vmem:[%s3271_s4 + $0x18] sm:$0xff]  ;;  %v2967_v57 = vld [vmem:[%s3270_s3] sm:$0xff]  ;;  %v2989_v7 = vld [vmem:[%s3270_s3 + $0x8] sm:$0xff]  ;;  %s2826_s21 = smov 56   ;;  %s2827_s22 = smov 80   ;;  %vm1678_vm6 = vcmask 195584  }
  0x19   :  { %61 = vperm.xlu0 %2709, %v54_v6   ;;  %2621 = vmatprep.subr.bf16.mxu0 %v2620_v8  ;;  %v2636_v38 = vpack.c.bf16 %v210_v37, %v209_v36  ;;  %v198_v60 = vrot.slane %v2967_v57, %v197_v56  ;;  %v204_v0 = vrot.slane %v2967_v57, %v203_v58  ;;  %v296_v16 = vld [vmem:[#allocation2] sm:$0x1]  ;;  %s2828_s24 = smov 112   ;;  %s2829_s0 = smov 48   ;;  %vm1675_vm7 = vcmask 130048  }
  0x1a   :  { %2633 = vmatprep.subr.bf16.mxu1 %v2632_v35  ;;  %s2830_s25 = smov 72   ;;  %s2831_s2 = smov 104  }
  0x1b   :  { %2635 = vmatpush3.bf16.msra.mxu1 %v2632_v35  ;;  %s2832_s26 = smov 40   ;;  %s2833_s27 = smov 8  }
  0x1c   :  { %2623 = vmatpush3.bf16.msra.mxu0 %v2620_v8  ;;  %2637 = vmatprep.subr.bf16.mxu1 %v2636_v38  ;;  %v214_v8 = vrot.slane %v2989_v7, %v197_v56  ;;  %s2834_s4 = smov 24   ;;  %s2835_s28 = smov [#allocation5]  }
  0x1d   :  { %2625 = vmatprep.subr.bf16.mxu0 %v2624_v11  ;;  %s2309_s29 = sshll.u32 %s2835_s28, 4  ;;  %s2310_s29 = int_to_ptr.vmem [resolvable:$true] %s2309_s29 }
  0x1e   :  { %p2795_p9 = scmp.lt.s32.totalorder %s2310_s29, %s2310_s29 }
  0x1f   :  { %2639 = vmatpush3.bf16.msra.mxu1 %v2636_v38 }
  0x20   :  { %2627 = vmatpush3.bf16.msra.mxu0 %v2624_v11  ;;  %2473 = vmatprep.subr.mxu1 %v2820_v15 }
  0x21   :  { %2629 = vmatprep.subr.bf16.mxu0 %v2628_v14 }
  0x24   :  { %2631 = vmatpush3.bf16.msra.mxu0 %v2628_v14 }
  0x25   :  { %2483 = vmatprep.subr.mxu0 %v2820_v15 }
  0x94   :  { %v59_v18 = vpop.permute.xlu0 %58 }
  0x95   :  { %vm63_vm1 = vcmp.eq.s32.totalorder %v59_v18, %v56_v17  ;;  %v297_v18 = vld [vmem:[#allocation2 + $0x1] sm:$0x1] }
  0x96   :  { %v2321_v19 = vsel %vm63_vm1, 1.0, %v2820_v15 }
  0x97   :  { %2459 = vmatprep.mubr.msk.f32.mxu0 %vm77_vm0, %v2321_v19 }
  0x98   :  { %v62_v20 = vpop.permute.xlu0 %61 }
  0x99   :  { %vm64_vm2 = vcmp.eq.s32.totalorder %v62_v20, %v56_v17  ;;  %v298_v17 = vsub.f32 1.0, %v296_v16  ;;  %v299_v20 = vsub.f32 1.0, %v297_v18 }
  0x9a   :  { %v2322_v21 = vsel %vm64_vm2, 1.0, %v2820_v15 }
  0x9b   :  { %2460 = vmatmul.mubr.msk.f32.vlgmr.msra.gmra.mrb[0].mxu0 %vm77_vm0, %v2322_v21  ;;  %v300_v19 = vmul.f32 -1e+09, %v298_v17 }
  0x9c   :  { %2485 = vmatprep.mubr.msk.f32.mxu0 %vm2821_vm4, %v2820_v15 }
  0x9d   :  { %v3010_v21 = vrot.slane %v300_v19, %v197_v56 }
 0x16e   :  { %v2461_v23 = vpop.f32.mrb[0].mxu0 }
 0x16f   :  { %v160_v24 = vadd.f32 %v2461_v23, %v52_v22  ;;  %v150_v25 = vpop.f32.mrb[1].mxu0 }
 0x170   :  { %v159_v26 = vadd.f32 %v150_v25, %v52_v22  ;;  %v301_v22 = vmul.f32 -1e+09, %v299_v20 }
 0x171   :  { %v165_v27 = vsel %vm161_vm3, %v160_v24, 0.0  ;;  %v172_v31 = vmul.f32 %v160_v24, %v160_v24 }
 0x172   :  { %166 = vadd.xlane.f32.xlu1 %v165_v27  ;;  %v171_v28 = vmul.f32 %v159_v26, %v159_v26  ;;  %v162_v30 = vsel %vm161_vm3, %v159_v26, 0.0  ;;  %v3013_v27 = vrot.slane %v301_v22, %v197_v56 }
 0x173   :  { %v176_v32 = vsel %vm161_vm3, %v172_v31, 0.0 }
 0x174   :  { %v173_v29 = vsel %vm161_vm3, %v171_v28, 0.0 }
 0x175   :  { %174 = vadd.xlane.f32.xlu0 %v173_v29 }
 0x176   :  { %163 = vadd.xlane.f32.xlu1 %v162_v30 }
 0x17a   :  { %177 = vadd.xlane.f32.xlu1 %v176_v32 }
 0x1ff   :  { %v167_v39 = vpop.xlane.xlu1 %166 }
 0x200   :  { %v170_v42 = vmul.f32 0.03125, %v167_v39 }
 0x202   :  { %v175_v40 = vpop.xlane.xlu0 %174  ;;  %v182_v47 = vmul.f32 %v170_v42, %v170_v42  ;;  %v188_v62 = vsub.f32 %v160_v24, %v170_v42 }
 0x203   :  { %v164_v41 = vpop.xlane.xlu1 %163  ;;  %v179_v44 = vmul.f32 0.03125, %v175_v40 }
 0x204   :  { %v169_v43 = vmul.f32 0.03125, %v164_v41 }
 0x206   :  { %v181_v45 = vmul.f32 %v169_v43, %v169_v43  ;;  %v187_v59 = vsub.f32 %v159_v26, %v169_v43 }
 0x207   :  { %v178_v46 = vpop.xlane.xlu1 %177 }
 0x208   :  { %v183_v48 = vsub.f32 %v179_v44, %v181_v45  ;;  %v180_v49 = vmul.f32 0.03125, %v178_v46 }
 0x20a   :  { %v185_v50 = vmax.f32 %v183_v48, 0.0  ;;  %v184_v51 = vsub.f32 %v180_v49, %v182_v47 }
 0x20c   :  { %v189_v52 = vadd.f32 1e-12, %v185_v50  ;;  %v186_v53 = vmax.f32 %v184_v51, 0.0 }
 0x20e   :  { %2710 = vrsqrt.f32 %v189_v52  ;;  %v190_v54 = vadd.f32 1e-12, %v186_v53 }
 0x210   :  { %2712 = vrsqrt.f32 %v190_v54 }
 0x218   :  { %v2711_v61 = vpop.eup %2710 }
 0x219   :  { %v193_v63 = vmul.f32 %v2711_v61, %v187_v59 }
 0x21a   :  { %v2713_v1 = vpop.eup %2712 }
 0x21b   :  { %v194_v2 = vmul.f32 %v2713_v1, %v188_v62  ;;  %v199_v3 = vmul.f32 %v198_v60, %v193_v63 }
 0x21d   :  { %v200_v4 = vmul.f32 %v198_v60, %v194_v2  ;;  %v2974_v5 = vadd.f32 %v204_v0, %v199_v3 }
 0x21f   :  { %v2976_v6 = vadd.f32 %v204_v0, %v200_v4  ;;  %2470 = vmatprep.mubr.msk.f32.mxu1 %vm161_vm3, %v2974_v5 }
 0x221   :  { %2471 = vmatmul.mubr.msk.f32.vlgmr.msra.gmra.mrb[0].mxu1 %vm161_vm3, %v2976_v6 }
 0x222   :  { %2475 = vmatprep.mubr.msk.f32.mxu1 %vm2821_vm4, %v2820_v15 }
 0x2f4   :  { %v2472_v9 = vpop.f32.mrb[0].mxu1 }
 0x2f5   :  { %v287_v10 = vpop.f32.mrb[1].mxu1  ;;  %v2995_v12 = vadd.f32 %v2472_v9, %v214_v8 }
 0x2f6   :  { %v2992_v11 = vadd.f32 %v287_v10, %v214_v8 }
 0x2f8   :  { %315 = vrot.lane.b32.xlu1 %v2992_v11, %s2822_s17 }
 0x2fc   :  { %393 = vrot.lane.b32.xlu1 %v2995_v12, %s2822_s17 }
 0x36a   :  { %v316_v13 = vpop.permute.xlu1 %315 }
 0x36b   :  { %2474 = vmatpush3.xpose.msk.msra.mxu1 %vm317_vm5, %v316_v13 }
 0x36c   :  { %2478 = vmatprep.subr.mxu1 %v2820_v15 }
 0x36e   :  { %2476 = vmatmul.mubr.msk.f32.vlgmr.msra.gmra.mrb[2].mxu1 %vm317_vm5, %v2992_v11  ;;  %v394_v14 = vpop.permute.xlu1 %393 }
 0x36f   :  { %2479 = vmatpush3.xpose.msk.msra.mxu1 %vm317_vm5, %v394_v14  ;;  %2480 = vmatprep.mubr.msk.f32.mxu1 %vm2821_vm4, %v2820_v15 }
 0x370   :  { %2488 = vmatprep.subr.mxu1 %v2820_v15 }
 0x372   :  { %2481 = vmatmul.mubr.msk.f32.vlgmr.msra.gmra.mrb[4].mxu1 %vm317_vm5, %v2995_v12 }
 0x373   :  { %2490 = vmatprep.mubr.msk.f32.mxu1 %vm2821_vm4, %v2820_v15 }
 0x441   :  { %v388_v23 = vpop.f32.mrb[2].mxu1 }
 0x442   :  { %v469_v24 = vmul.f32 0.35355338, %v388_v23  ;;  %v2477_v25 = vpop.f32.mrb[3].mxu1 }
 0x444   :  { %v471_v26 = vadd.f32 %v469_v24, %v3010_v21 }
 0x445   :  { %v465_v28 = vpop.f32.mrb[4].mxu1 }
 0x446   :  { %v470_v29 = vmul.f32 0.35355338, %v465_v28  ;;  %v2482_v30 = vpop.f32.mrb[5].mxu1  ;;  %v473_v31 = vsel %vm317_vm5, %v471_v26, -inf }
 0x447   :  { %474 = vmax.xlane.f32.xlu1 %v473_v31 }
 0x448   :  { %v472_v32 = vadd.f32 %v470_v29, %v3013_v27 }
 0x44a   :  { %v476_v33 = vsel %vm317_vm5, %v472_v32, -inf }
 0x44b   :  { %477 = vmax.xlane.f32.xlu0 %v476_v33 }
 0x458   :  { %571 = vrot.lane.b32.xlu1 %v2995_v12, %s2823_s18 }
 0x461   :  { %495 = vrot.lane.b32.xlu0 %v2992_v11, %s2823_s18 }
 0x465   :  { %649 = vrot.lane.b32.xlu0 %v2992_v11, %s2824_s19 }
 0x469   :  { %727 = vrot.lane.b32.xlu0 %v2995_v12, %s2824_s19 }
 0x46d   :  { %647 = vrot.lane.b32.xlu0 %v2992_v11, %s2825_s20 }
 0x4d4   :  { %v475_v34 = vpop.xlane.xlu1 %474 }
 0x4d5   :  { %v479_v35 = vsub.f32 %v471_v26, %v475_v34 }
 0x4d7   :  { %v481_v36 = vmul.f32 1.442695, %v479_v35 }
 0x4d8   :  { %v478_v37 = vpop.xlane.xlu0 %477  ;;  %v572_v38 = vpop.permute.xlu1 %571 }
 0x4d9   :  { %2714 = vpow2.f32 %v481_v36  ;;  %v480_v39 = vsub.f32 %v472_v32, %v478_v37  ;;  %2489 = vmatpush3.msra.mxu1 %v572_v38 }
 0x4da   :  { %2498 = vmatprep.subr.mxu1 %v2820_v15 }
 0x4db   :  { %v483_v40 = vmul.f32 1.442695, %v480_v39 }
 0x4dc   :  { %v496_v41 = vpop.permute.xlu0 %495 }
 0x4dd   :  { %2716 = vpow2.f32 %v483_v40  ;;  %2484 = vmatpush3.msra.mxu0 %v496_v41 }
 0x4de   :  { %2493 = vmatprep.subr.mxu0 %v2820_v15 }
 0x4e0   :  { %v650_v46 = vpop.permute.xlu0 %649 }
 0x4e3   :  { %v2715_v42 = vpop.eup %2714 }
 0x4e4   :  { %v485_v43 = vsel %vm317_vm5, %v2715_v42, 0.0  ;;  %v728_v47 = vpop.permute.xlu0 %727 }
 0x4e5   :  { %486 = vadd.xlane.f32.xlu0 %v485_v43 }
 0x4e7   :  { %v2717_v44 = vpop.eup %2716 }
 0x4e8   :  { %v488_v45 = vsel %vm317_vm5, %v2717_v44, 0.0  ;;  %v648_v48 = vpop.permute.xlu0 %647 }
 0x4e9   :  { %489 = vadd.xlane.f32.xlu0 %v488_v45 }
 0x4ff   :  { %725 = vrot.lane.b32.xlu0 %v2995_v12, %s2825_s20 }
 0x572   :  { %v487_v49 = vpop.xlane.xlu0 %486 }
 0x573   :  { %2718 = vrcp.f32 %v487_v49 }
 0x576   :  { %v490_v50 = vpop.xlane.xlu0 %489 }
 0x577   :  { %2720 = vrcp.f32 %v490_v50 }
 0x57a   :  { %v726_v56 = vpop.permute.xlu0 %725 }
 0x57d   :  { %v2719_v51 = vpop.eup %2718 }
 0x57e   :  { %v493_v52 = vmul.f32 %v2719_v51, %v2715_v42 }
 0x580   :  { %2486 = vmatmul.mubr.msk.f32.vlgmr.msra.gmra.mrb[2].mxu0 %vm317_vm5, %v493_v52 }
 0x581   :  { %v2721_v53 = vpop.eup %2720  ;;  %2494 = vmatpush3.xpose.msk.msra.mxu0 %vm317_vm5, %v650_v46  ;;  %2495 = vmatprep.mubr.msk.f32.mxu0 %vm2821_vm4, %v2820_v15 }
 0x582   :  { %v494_v54 = vmul.f32 %v2721_v53, %v2717_v44  ;;  %2503 = vmatprep.subr.mxu0 %v2820_v15 }
 0x584   :  { %2491 = vmatmul.mubr.msk.f32.vlgmr.msra.gmra.mrb[6].mxu1 %vm317_vm5, %v494_v54  ;;  %2496 = vmatmul.mubr.msk.f32.vlgmr.msra.gmra.mrb[4].mxu0 %vm317_vm5, %v648_v48 }
 0x585   :  { %2499 = vmatpush3.xpose.msk.msra.mxu1 %vm317_vm5, %v728_v47  ;;  %2500 = vmatprep.mubr.msk.f32.mxu1 %vm2821_vm4, %v2820_v15 }
 0x586   :  { %2508 = vmatprep.subr.mxu1 %v2820_v15  ;;  %2505 = vmatprep.mubr.msk.f32.mxu0 %vm2821_vm4, %v2820_v15 }
 0x588   :  { %2501 = vmatmul.mubr.msk.f32.vlgmr.msra.gmra.mrb[8].mxu1 %vm317_vm5, %v726_v56 }
 0x589   :  { %2510 = vmatprep.mubr.msk.f32.mxu1 %vm2821_vm4, %v2820_v15 }
 0x653   :  { %v3044_v59 = vpop.f32.mrb[2].mxu0 }
 0x654   :  { %v2487_v60 = vpop.f32.mrb[3].mxu0 }
 0x657   :  { %v3046_v61 = vpop.f32.mrb[6].mxu1  ;;  %v721_v62 = vpop.f32.mrb[4].mxu0 }
 0x658   :  { %v803_v63 = vmul.f32 0.35355338, %v721_v62  ;;  %v2492_v0 = vpop.f32.mrb[7].mxu1  ;;  %v2497_v1 = vpop.f32.mrb[5].mxu0 }
 0x65a   :  { %v805_v2 = vadd.f32 %v803_v63, %v3010_v21 }
 0x65b   :  { %v799_v3 = vpop.f32.mrb[8].mxu1 }
 0x65c   :  { %v804_v4 = vmul.f32 0.35355338, %v799_v3  ;;  %v2502_v8 = vpop.f32.mrb[9].mxu1  ;;  %v807_v9 = vsel %vm317_vm5, %v805_v2, -inf }
 0x65d   :  { %808 = vmax.xlane.f32.xlu1 %v807_v9 }
 0x65e   :  { %v806_v10 = vadd.f32 %v804_v4, %v3013_v27 }
 0x660   :  { %v810_v13 = vsel %vm317_vm5, %v806_v10, -inf }
 0x661   :  { %811 = vmax.xlane.f32.xlu0 %v810_v13 }
 0x66e   :  { %905 = vrot.lane.b32.xlu1 %v2995_v12, %s2826_s21 }
 0x672   :  { %983 = vrot.lane.b32.xlu1 %v2992_v11, %s2827_s22 }
 0x677   :  { %829 = vrot.lane.b32.xlu0 %v2992_v11, %s2826_s21 }
 0x6ea   :  { %v809_v14 = vpop.xlane.xlu1 %808 }
 0x6eb   :  { %v813_v16 = vsub.f32 %v805_v2, %v809_v14 }
 0x6ed   :  { %v815_v17 = vmul.f32 1.442695, %v813_v16 }
 0x6ee   :  { %v812_v18 = vpop.xlane.xlu0 %811  ;;  %v906_v19 = vpop.permute.xlu1 %905 }
 0x6ef   :  { %2722 = vpow2.f32 %v815_v17  ;;  %v814_v20 = vsub.f32 %v806_v10, %v812_v18  ;;  %2509 = vmatpush3.msra.mxu1 %v906_v19 }
 0x6f0   :  { %2518 = vmatprep.subr.mxu1 %v2820_v15 }
 0x6f1   :  { %v817_v22 = vmul.f32 1.442695, %v814_v20 }
 0x6f2   :  { %v830_v23 = vpop.permute.xlu0 %829  ;;  %v984_v29 = vpop.permute.xlu1 %983 }
 0x6f3   :  { %2724 = vpow2.f32 %v817_v22  ;;  %2504 = vmatpush3.msra.mxu0 %v830_v23 }
 0x6f4   :  { %2513 = vmatprep.subr.mxu0 %v2820_v15 }
 0x6f9   :  { %v2723_v24 = vpop.eup %2722 }
 0x6fa   :  { %v819_v25 = vsel %vm317_vm5, %v2723_v24, 0.0 }
 0x6fb   :  { %820 = vadd.xlane.f32.xlu0 %v819_v25 }
 0x6fd   :  { %v2725_v26 = vpop.eup %2724 }
 0x6fe   :  { %v822_v28 = vsel %vm317_vm5, %v2725_v26, 0.0 }
 0x6ff   :  { %823 = vadd.xlane.f32.xlu1 %v822_v28 }
 0x710   :  { %981 = vrot.lane.b32.xlu1 %v2992_v11, %s2828_s24 }
 0x711   :  { %1061 = vrot.lane.b32.xlu0 %v2995_v12, %s2827_s22 }
 0x715   :  { %1059 = vrot.lane.b32.xlu0 %v2995_v12, %s2828_s24 }
 0x788   :  { %v821_v30 = vpop.xlane.xlu0 %820 }
 0x789   :  { %2726 = vrcp.f32 %v821_v30 }
 0x78c   :  { %v824_v31 = vpop.xlane.xlu1 %823  ;;  %v1062_v35 = vpop.permute.xlu0 %1061 }
 0x78d   :  { %2728 = vrcp.f32 %v824_v31 }
 0x790   :  { %v982_v37 = vpop.permute.xlu1 %981  ;;  %v1060_v38 = vpop.permute.xlu0 %1059 }
 0x793   :  { %v2727_v32 = vpop.eup %2726 }
 0x794   :  { %v827_v33 = vmul.f32 %v2727_v32, %v2723_v24 }
 0x796   :  { %2506 = vmatmul.mubr.msk.f32.vlgmr.msra.gmra.mrb[6].mxu0 %vm317_vm5, %v827_v33 }
 0x797   :  { %v2729_v34 = vpop.eup %2728  ;;  %2514 = vmatpush3.xpose.msk.msra.mxu0 %vm317_vm5, %v984_v29  ;;  %2515 = vmatprep.mubr.msk.f32.mxu0 %vm2821_vm4, %v2820_v15 }
 0x798   :  { %v828_v36 = vmul.f32 %v2729_v34, %v2725_v26  ;;  %2523 = vmatprep.subr.mxu0 %v2820_v15 }
 0x79a   :  { %2511 = vmatmul.mubr.msk.f32.vlgmr.msra.gmra.mrb[10].mxu1 %vm317_vm5, %v828_v36  ;;  %2516 = vmatmul.mubr.msk.f32.vlgmr.msra.gmra.mrb[8].mxu0 %vm317_vm5, %v982_v37 }
 0x79b   :  { %2519 = vmatpush3.xpose.msk.msra.mxu1 %vm317_vm5, %v1062_v35  ;;  %2520 = vmatprep.mubr.msk.f32.mxu1 %vm2821_vm4, %v2820_v15 }
 0x79c   :  { %2528 = vmatprep.subr.mxu1 %v2820_v15  ;;  %2525 = vmatprep.mubr.msk.f32.mxu0 %vm2821_vm4, %v2820_v15 }
 0x79e   :  { %2521 = vmatmul.mubr.msk.f32.vlgmr.msra.gmra.mrb[12].mxu1 %vm317_vm5, %v1060_v38 }
 0x79f   :  { %2530 = vmatprep.mubr.msk.f32.mxu1 %vm2821_vm4, %v2820_v15 }
 0x869   :  { %v3078_v39 = vpop.f32.mrb[6].mxu0 }
 0x86a   :  { %v2507_v40 = vpop.f32.mrb[7].mxu0 }
 0x86d   :  { %v3080_v41 = vpop.f32.mrb[10].mxu1  ;;  %v1055_v42 = vpop.f32.mrb[8].mxu0 }
 0x86e   :  { %v1137_v43 = vmul.f32 0.35355338, %v1055_v42  ;;  %v2512_v44 = vpop.f32.mrb[11].mxu1  ;;  %v2517_v45 = vpop.f32.mrb[9].mxu0 }
 0x870   :  { %v1139_v46 = vadd.f32 %v1137_v43, %v3010_v21 }
 0x871   :  { %v1133_v47 = vpop.f32.mrb[12].mxu1 }
 0x872   :  { %v1138_v48 = vmul.f32 0.35355338, %v1133_v47  ;;  %v2522_v49 = vpop.f32.mrb[13].mxu1  ;;  %v1141_v50 = vsel %vm317_vm5, %v1139_v46, -inf }
 0x873   :  { %1142 = vmax.xlane.f32.xlu1 %v1141_v50 }
 0x874   :  { %v1140_v51 = vadd.f32 %v1138_v48, %v3013_v27 }
 0x876   :  { %v1144_v52 = vsel %vm317_vm5, %v1140_v51, -inf }
 0x877   :  { %1145 = vmax.xlane.f32.xlu0 %v1144_v52  ;;  %v1682_v52 = vld [vmem:[%s3272_s5 + $0x8] sm:$0xff] }
 0x884   :  { %1239 = vrot.lane.b32.xlu1 %v2995_v12, %s2829_s0 }
 0x888   :  { %1317 = vrot.lane.b32.xlu1 %v2992_v11, %s2830_s25 }
 0x88d   :  { %1163 = vrot.lane.b32.xlu0 %v2992_v11, %s2829_s0 }
 0x900   :  { %v1143_v53 = vpop.xlane.xlu1 %1142 }
 0x901   :  { %v1147_v54 = vsub.f32 %v1139_v46, %v1143_v53 }
 0x903   :  { %v1149_v56 = vmul.f32 1.442695, %v1147_v54  ;;  %v1683_v54 = vld [vmem:[%s3272_s5 + $0x10] sm:$0xff] }
 0x904   :  { %v1146_v60 = vpop.xlane.xlu0 %1145  ;;  %v1240_v62 = vpop.permute.xlu1 %1239 }
 0x905   :  { %2730 = vpow2.f32 %v1149_v56  ;;  %v1148_v63 = vsub.f32 %v1140_v51, %v1146_v60  ;;  %2529 = vmatpush3.msra.mxu1 %v1240_v62  ;;  %v1684_v56 = vld [vmem:[%s3272_s5 + $0x18] sm:$0xff] }
 0x906   :  { %2538 = vmatprep.subr.mxu1 %v2820_v15  ;;  %v2644_v60 = vpack.c.bf16 %v1684_v56, %v1683_v54 }
 0x907   :  { %v1151_v0 = vmul.f32 1.442695, %v1148_v63 }
 0x908   :  { %v1164_v1 = vpop.permute.xlu0 %1163  ;;  %v1318_v9 = vpop.permute.xlu1 %1317 }
 0x909   :  { %2732 = vpow2.f32 %v1151_v0  ;;  %2524 = vmatpush3.msra.mxu0 %v1164_v1 }
 0x90a   :  { %2533 = vmatprep.subr.mxu0 %v2820_v15 }
 0x90f   :  { %v2731_v2 = vpop.eup %2730 }
 0x910   :  { %v1153_v3 = vsel %vm317_vm5, %v2731_v2, 0.0 }
 0x911   :  { %1154 = vadd.xlane.f32.xlu0 %v1153_v3 }
 0x913   :  { %v2733_v4 = vpop.eup %2732 }
 0x914   :  { %v1156_v8 = vsel %vm317_vm5, %v2733_v4, 0.0 }
 0x915   :  { %1157 = vadd.xlane.f32.xlu1 %v1156_v8 }
 0x926   :  { %1315 = vrot.lane.b32.xlu1 %v2992_v11, %s2831_s2 }
 0x927   :  { %1395 = vrot.lane.b32.xlu0 %v2995_v12, %s2830_s25 }
 0x92b   :  { %1393 = vrot.lane.b32.xlu0 %v2995_v12, %s2831_s2 }
 0x99e   :  { %v1155_v10 = vpop.xlane.xlu0 %1154 }
 0x99f   :  { %2734 = vrcp.f32 %v1155_v10 }
 0x9a2   :  { %v1158_v13 = vpop.xlane.xlu1 %1157  ;;  %v1396_v18 = vpop.permute.xlu0 %1395 }
 0x9a3   :  { %2736 = vrcp.f32 %v1158_v13 }
 0x9a6   :  { %v1316_v20 = vpop.permute.xlu1 %1315  ;;  %v1394_v22 = vpop.permute.xlu0 %1393 }
 0x9a9   :  { %v2735_v14 = vpop.eup %2734 }
 0x9aa   :  { %v1161_v16 = vmul.f32 %v2735_v14, %v2731_v2 }
 0x9ac   :  { %2526 = vmatmul.mubr.msk.f32.vlgmr.msra.gmra.mrb[10].mxu0 %vm317_vm5, %v1161_v16 }
 0x9ad   :  { %v2737_v17 = vpop.eup %2736  ;;  %2534 = vmatpush3.xpose.msk.msra.mxu0 %vm317_vm5, %v1318_v9  ;;  %2535 = vmatprep.mubr.msk.f32.mxu0 %vm2821_vm4, %v2820_v15 }
 0x9ae   :  { %v1162_v19 = vmul.f32 %v2737_v17, %v2733_v4  ;;  %2543 = vmatprep.subr.mxu0 %v2820_v15 }
 0x9b0   :  { %2531 = vmatmul.mubr.msk.f32.vlgmr.msra.gmra.mrb[14].mxu1 %vm317_vm5, %v1162_v19  ;;  %2536 = vmatmul.mubr.msk.f32.vlgmr.msra.gmra.mrb[12].mxu0 %vm317_vm5, %v1316_v20  ;;  %v1688_v20 = vrot.slane %v2989_v7, %v203_v58 }
 0x9b1   :  { %2539 = vmatpush3.xpose.msk.msra.mxu1 %vm317_vm5, %v1396_v18  ;;  %2540 = vmatprep.mubr.msk.f32.mxu1 %vm2821_vm4, %v2820_v15 }
 0x9b2   :  { %2548 = vmatprep.subr.mxu1 %v2820_v15  ;;  %2545 = vmatprep.mubr.msk.f32.mxu0 %vm2821_vm4, %v2820_v15 }
 0x9b4   :  { %2541 = vmatmul.mubr.msk.f32.vlgmr.msra.gmra.mrb[16].mxu1 %vm317_vm5, %v1394_v22 }
 0x9b5   :  { %2550 = vmatprep.mubr.msk.f32.mxu1 %vm2821_vm4, %v2820_v15 }
 0xa7f   :  { %v1235_v23 = vpop.f32.mrb[10].mxu0 }
 0xa80   :  { %v2527_v24 = vpop.f32.mrb[11].mxu0 }
 0xa83   :  { %v1311_v25 = vpop.f32.mrb[14].mxu1  ;;  %v1389_v26 = vpop.f32.mrb[12].mxu0 }
 0xa84   :  { %v1471_v28 = vmul.f32 0.35355338, %v1389_v26  ;;  %v2532_v29 = vpop.f32.mrb[15].mxu1  ;;  %v2537_v30 = vpop.f32.mrb[13].mxu0 }
 0xa86   :  { %v1473_v31 = vadd.f32 %v1471_v28, %v3010_v21 }
 0xa87   :  { %v1467_v32 = vpop.f32.mrb[16].mxu1 }
 0xa88   :  { %v1472_v33 = vmul.f32 0.35355338, %v1467_v32  ;;  %v2542_v34 = vpop.f32.mrb[17].mxu1  ;;  %v1475_v35 = vsel %vm317_vm5, %v1473_v31, -inf }
 0xa89   :  { %1476 = vmax.xlane.f32.xlu1 %v1475_v35  ;;  %v1819_v34 = vld [vmem:[%s3273_s6 + $0x18] sm:$0xff] }
 0xa8a   :  { %v1474_v36 = vadd.f32 %v1472_v33, %v3013_v27  ;;  %v1818_v33 = vld [vmem:[%s3273_s6 + $0x10] sm:$0xff] }
 0xa8b   :  { %v2652_v35 = vpack.c.bf16 %v1819_v34, %v1818_v33 }
 0xa8c   :  { %v1478_v37 = vsel %vm317_vm5, %v1474_v36, -inf }
 0xa8d   :  { %1479 = vmax.xlane.f32.xlu0 %v1478_v37 }
 0xb16   :  { %v1477_v15 = vpop.xlane.xlu1 %1476 }
 0xb17   :  { %v1481_v38 = vsub.f32 %v1473_v31, %v1477_v15 }
 0xb19   :  { %v1483_v40 = vmul.f32 1.442695, %v1481_v38 }
 0xb1a   :  { %v1480_v42 = vpop.xlane.xlu0 %1479 }
 0xb1b   :  { %2738 = vpow2.f32 %v1483_v40  ;;  %v1482_v43 = vsub.f32 %v1474_v36, %v1480_v42 }
 0xb1d   :  { %v1485_v44 = vmul.f32 1.442695, %v1482_v43 }
 0xb1f   :  { %2740 = vpow2.f32 %v1485_v44 }
 0xb25   :  { %v2739_v21 = vpop.eup %2738 }
 0xb26   :  { %v1487_v45 = vsel %vm317_vm5, %v2739_v21, 0.0 }
 0xb27   :  { %1488 = vadd.xlane.f32.xlu0 %v1487_v45 }
 0xb29   :  { %v2741_v46 = vpop.eup %2740 }
 0xb2a   :  { %v1490_v47 = vsel %vm317_vm5, %v2741_v46, 0.0 }
 0xb2b   :  { %1491 = vadd.xlane.f32.xlu1 %v1490_v47 }
 0xb3c   :  { %1573 = vrot.lane.b32.xlu1 %v2995_v12, %s2832_s26 }
 0xb3d   :  { %1497 = vrot.lane.b32.xlu0 %v2992_v11, %s2832_s26 }
 0xb40   :  { %1651 = vrot.lane.b32.xlu1 %v3078_v39, %s2833_s27 }
 0xb41   :  { %1653 = vrot.lane.b32.xlu0 %v3080_v41, %s2833_s27  ;;  %v1681_v41 = vld [vmem:[%s3272_s5] sm:$0xff] }
 0xb42   :  { %v2640_v53 = vpack.c.bf16 %v1682_v52, %v1681_v41 }
 0xb44   :  { %1659 = vrot.lane.b32.xlu1 %v1235_v23, %s2817_s23 }
 0xb45   :  { %1661 = vrot.lane.b32.xlu0 %v1311_v25, %s2817_s23  ;;  %s2790_s23 = scalar_lea.vmem %s2310_s29, 256 }
 0xb46   :  { %p2791_p8 = scmp.ne.s32.totalorder %s2310_s29, %s2790_s23  ;;  %p2796_p10 = scmp.lt.s32.totalorder %s2790_s23, %s2790_s23 }
 0xb48   :  { %p2797_p11 = por %p2796_p10, %p2795_p9 }
 0xb4a   :  { %p2798_p12 = pnand %p2797_p11, %p2791_p8 }
 0xbb4   :  { %v1489_v27 = vpop.xlane.xlu0 %1488 }
 0xbb5   :  { %2742 = vrcp.f32 %v1489_v27 }
 0xbb8   :  { %v1498_v48 = vpop.permute.xlu0 %1497  ;;  %v1492_v49 = vpop.xlane.xlu1 %1491 }
 0xbb9   :  { %2744 = vrcp.f32 %v1492_v49  ;;  %2544 = vmatpush3.msra.mxu0 %v1498_v48 }
 0xbba   :  { %2641 = vmatprep.subr.bf16.mxu0 %v2640_v53 }
 0xbbc   :  { %v1574_v12 = vpop.permute.xlu1 %1573  ;;  %v1654_v3 = vpop.permute.xlu0 %1653 }
 0xbbd   :  { %2549 = vmatpush3.msra.mxu1 %v1574_v12  ;;  %v1674_v16 = vsel %vm317_vm5, %v3046_v61, %v1654_v3  ;;  %v1924_v3 = vld [vmem:[%s3274_s7 + $0x8] sm:$0xff] }
 0xbbf   :  { %v2743_v11 = vpop.eup %2742 }
 0xbc0   :  { %v1495_v50 = vmul.f32 %v2743_v11, %v2739_v21  ;;  %v1652_v2 = vpop.permute.xlu1 %1651  ;;  %v1662_v9 = vpop.permute.xlu0 %1661  ;;  %v1806_v11 = vsub.s32 2, %v2961_v55 }
 0xbc1   :  { %v1673_v8 = vsel %vm317_vm5, %v3044_v59, %v1652_v2  ;;  %v1677_v17 = vsel %vm1675_vm7, %v1674_v16, %v1662_v9  ;;  %v1923_v2 = vld [vmem:[%s3274_s7] sm:$0xff]  ;;  %v1926_v9 = vld [vmem:[%s3274_s7 + $0x18] sm:$0xff] }
 0xbc2   :  { %2546 = vmatmul.mubr.msk.f32.vlgmr.msra.gmra.mrb[14].mxu0 %vm317_vm5, %v1495_v50  ;;  %v1812_v50 = vsub.s32 3, %v2961_v55 }
 0xbc3   :  { %v2745_v39 = vpop.eup %2744  ;;  %2643 = vmatpush3.bf16.msra.mxu0 %v2640_v53 }
 0xbc4   :  { %v1496_v51 = vmul.f32 %v2745_v39, %v2741_v46  ;;  %2645 = vmatprep.subr.bf16.mxu0 %v2644_v60  ;;  %v1660_v4 = vpop.permute.xlu1 %1659  ;;  %v1813_v56 = vrot.slane %v2967_v57, %v1812_v50 }
 0xbc5   :  { %v1676_v10 = vsel %vm1675_vm7, %v1673_v8, %v1660_v4  ;;  %v2656_v4 = vpack.c.bf16 %v1924_v3, %v1923_v2  ;;  %v1925_v8 = vld [vmem:[%s3274_s7 + $0x10] sm:$0xff] }
 0xbc6   :  { %2551 = vmatmul.mubr.msk.f32.vlgmr.msra.gmra.mrb[18].mxu1 %vm317_vm5, %v1496_v51  ;;  %v1807_v51 = vrot.slane %v2967_v57, %v1806_v11 }
 0xbc7   :  { %2647 = vmatpush3.bf16.msra.mxu0 %v2644_v60 }
 0xbc8   :  { %2657 = vmatprep.subr.bf16.mxu0 %v2656_v4 }
 0xc95   :  { %v1569_v62 = vpop.f32.mrb[14].mxu0 }
 0xc96   :  { %1667 = vrot.lane.b32.xlu1 %v1569_v62, %s2834_s4  ;;  %v2547_v63 = vpop.f32.mrb[15].mxu0 }
 0xc99   :  { %v1645_v0 = vpop.f32.mrb[18].mxu1 }
 0xc9a   :  { %1669 = vrot.lane.b32.xlu0 %v1645_v0, %s2834_s4  ;;  %v2552_v1 = vpop.f32.mrb[19].mxu1 }
 0xd08   :  { %v1668_v13 = vpop.permute.xlu1 %1667 }
 0xd09   :  { %v1679_v14 = vsel %vm1678_vm6, %v1676_v10, %v1668_v13  ;;  %v2660_v10 = vpack.c.bf16 %v1926_v9, %v1925_v8  ;;  %v1927_v13 = vld [vmem:[%s3274_s7 + $0x20] sm:$0xff] }
 0xd0a   :  { %2561 = vmatprep.mubr.msk.f32.mxu0 %vm161_vm3, %v1679_v14  ;;  %v1928_v14 = vld [vmem:[%s3274_s7 + $0x28] sm:$0xff] }
 0xd0b   :  { %v2664_v16 = vpack.c.bf16 %v1928_v14, %v1927_v13 }
 0xd0c   :  { %v1670_v18 = vpop.permute.xlu0 %1669 }
 0xd0d   :  { %v1680_v19 = vsel %vm1678_vm6, %v1677_v17, %v1670_v18  ;;  %v1929_v17 = vld [vmem:[%s3274_s7 + $0x30] sm:$0xff]  ;;  %v1930_v18 = vld [vmem:[%s3274_s7 + $0x38] sm:$0xff] }
 0xd0e   :  { %2562 = vmatmul.mubr.msk.f32.vlgmr.msra.gmra.mrb[16].mxu0 %vm161_vm3, %v1680_v19  ;;  %v2668_v19 = vpack.c.bf16 %v1930_v18, %v1929_v17  ;;  %v2052_v17 = vsub.s32 4, %v2961_v55  ;;  %v2058_v18 = vsub.s32 5, %v2961_v55 }
 0xd0f   :  { %2659 = vmatpush3.bf16.msra.mxu0 %v2656_v4 }
 0xd10   :  { %2661 = vmatprep.subr.bf16.mxu0 %v2660_v10 }
 0xd13   :  { %2663 = vmatpush3.bf16.msra.mxu0 %v2660_v10 }
 0xd14   :  { %2665 = vmatprep.subr.bf16.mxu0 %v2664_v16 }
 0xd17   :  { %2667 = vmatpush3.bf16.msra.mxu0 %v2664_v16 }
 0xd18   :  { %2669 = vmatprep.subr.bf16.mxu0 %v2668_v19 }
 0xd1b   :  { %2671 = vmatpush3.bf16.msra.mxu0 %v2668_v19 }
 0xde1   :  { %v2563_v22 = vpop.f32.mrb[16].mxu0 }
 0xde2   :  { %v1767_v59 = vadd.f32 %v2563_v22, %v1688_v20  ;;  %v1761_v23 = vpop.f32.mrb[17].mxu0 }
 0xde3   :  { %v1762_v24 = vadd.f32 %v1761_v23, %v1688_v20  ;;  %v1823_v20 = vrot.slane %v2989_v7, %v1806_v11 }
 0xde4   :  { %v1771_v25 = vadd.f32 %v1767_v59, %v2976_v6  ;;  %v1816_v6 = vld [vmem:[%s3273_s6] sm:$0xff] }
 0xde5   :  { %v1770_v26 = vadd.f32 %v1762_v24, %v2974_v5  ;;  %v1817_v5 = vld [vmem:[%s3273_s6 + $0x8] sm:$0xff] }
 0xde6   :  { %v1775_v28 = vsel %vm161_vm3, %v1771_v25, 0.0  ;;  %v1781_v30 = vmul.f32 %v1771_v25, %v1771_v25  ;;  %v2648_v32 = vpack.c.bf16 %v1817_v5, %v1816_v6 }
 0xde7   :  { %1776 = vadd.xlane.f32.xlu0 %v1775_v28  ;;  %v1772_v61 = vsel %vm161_vm3, %v1770_v26, 0.0  ;;  %v1780_v29 = vmul.f32 %v1770_v26, %v1770_v26 }
 0xde8   :  { %1773 = vadd.xlane.f32.xlu1 %v1772_v61  ;;  %v1785_v58 = vsel %vm161_vm3, %v1781_v30, 0.0  ;;  %2649 = vmatprep.subr.bf16.mxu1 %v2648_v32 }
 0xde9   :  { %v1782_v31 = vsel %vm161_vm3, %v1780_v29, 0.0  ;;  %2651 = vmatpush3.bf16.msra.mxu1 %v2648_v32 }
 0xdea   :  { %2653 = vmatprep.subr.bf16.mxu1 %v2652_v35 }
 0xdeb   :  { %1783 = vadd.xlane.f32.xlu0 %v1782_v31 }
 0xdec   :  { %1786 = vadd.xlane.f32.xlu1 %v1785_v58 }
 0xded   :  { %2655 = vmatpush3.bf16.msra.mxu1 %v2652_v35 }
 0xe74   :  { %v1777_v36 = vpop.xlane.xlu0 %1776 }
 0xe75   :  { %v1774_v37 = vpop.xlane.xlu1 %1773  ;;  %v1779_v15 = vmul.f32 0.03125, %v1777_v36 }
 0xe76   :  { %v1778_v38 = vmul.f32 0.03125, %v1774_v37 }
 0xe77   :  { %v1791_v21 = vmul.f32 %v1779_v15, %v1779_v15  ;;  %v1797_v52 = vsub.f32 %v1771_v25, %v1779_v15 }
 0xe78   :  { %v1790_v40 = vmul.f32 %v1778_v38, %v1778_v38  ;;  %v1784_v42 = vpop.xlane.xlu0 %1783  ;;  %v1796_v39 = vsub.f32 %v1770_v26, %v1778_v38 }
 0xe79   :  { %v1788_v43 = vmul.f32 0.03125, %v1784_v42  ;;  %v1787_v44 = vpop.xlane.xlu1 %1786 }
 0xe7a   :  { %v1789_v45 = vmul.f32 0.03125, %v1787_v44 }
 0xe7b   :  { %v1792_v46 = vsub.f32 %v1788_v43, %v1790_v40  ;;  %v1934_v40 = vrot.slane %v2989_v7, %v1812_v50  ;;  %v2062_v50 = vld [vmem:[%s3275_s8] sm:$0xff] }
 0xe7c   :  { %v1793_v47 = vsub.f32 %v1789_v45, %v1791_v21 }
 0xe7d   :  { %v1794_v27 = vmax.f32 %v1792_v46, 0.0 }
 0xe7e   :  { %v1795_v48 = vmax.f32 %v1793_v47, 0.0 }
 0xe7f   :  { %v1798_v49 = vadd.f32 1e-12, %v1794_v27 }
 0xe80   :  { %v1799_v12 = vadd.f32 1e-12, %v1795_v48 }
 0xe81   :  { %2746 = vrsqrt.f32 %v1798_v49 }
 0xe82   :  { %2748 = vrsqrt.f32 %v1799_v12 }
 0xe8b   :  { %v2747_v41 = vpop.eup %2746 }
 0xe8c   :  { %v2749_v53 = vpop.eup %2748  ;;  %v1802_v54 = vmul.f32 %v2747_v41, %v1796_v39  ;;  %v2063_v39 = vld [vmem:[%s3275_s8 + $0x8] sm:$0xff]  ;;  %v2064_v41 = vld [vmem:[%s3275_s8 + $0x10] sm:$0xff] }
 0xe8d   :  { %v1803_v60 = vmul.f32 %v2749_v53, %v1797_v52  ;;  %v2065_v52 = vld [vmem:[%s3275_s8 + $0x18] sm:$0xff] }
 0xe8e   :  { %v1808_v62 = vmul.f32 %v1807_v51, %v1802_v54  ;;  %v2676_v53 = vpack.c.bf16 %v2065_v52, %v2064_v41  ;;  %v2214_v41 = vld [vmem:[%s3276_s9 + $0x8] sm:$0xff] }
 0xe8f   :  { %v1809_v63 = vmul.f32 %v1807_v51, %v1803_v60  ;;  %v2672_v51 = vpack.c.bf16 %v2063_v39, %v2062_v50 }
 0xe90   :  { %v1814_v0 = vadd.f32 %v1813_v56, %v1808_v62 }
 0xe91   :  { %v1815_v1 = vadd.f32 %v1813_v56, %v1809_v63  ;;  %2673 = vmatprep.subr.bf16.mxu1 %v2672_v51 }
 0xe92   :  { %2572 = vmatprep.mubr.msk.f32.mxu1 %vm161_vm3, %v1814_v0 }
 0xe93   :  { %2573 = vmatmul.mubr.msk.f32.vlgmr.msra.gmra.mrb[20].mxu1 %vm161_vm3, %v1815_v1 }
 0xe94   :  { %2675 = vmatpush3.bf16.msra.mxu1 %v2672_v51  ;;  %v2213_v51 = vld [vmem:[%s3276_s9] sm:$0xff] }
 0xe95   :  { %2677 = vmatprep.subr.bf16.mxu1 %v2676_v53  ;;  %v2680_v52 = vpack.c.bf16 %v2214_v41, %v2213_v51 }
 0xe98   :  { %2679 = vmatpush3.bf16.msra.mxu1 %v2676_v53  ;;  %v2215_v53 = vld [vmem:[%s3276_s9 + $0x10] sm:$0xff] }
 0xe99   :  { %2681 = vmatprep.subr.bf16.mxu1 %v2680_v52 }
 0xf66   :  { %v2574_v22 = vpop.f32.mrb[20].mxu1 }
 0xf67   :  { %v1902_v59 = vadd.f32 %v2574_v22, %v1823_v20  ;;  %v1896_v23 = vpop.f32.mrb[21].mxu1 }
 0xf68   :  { %v1897_v24 = vadd.f32 %v1896_v23, %v1823_v20  ;;  %v2053_v20 = vrot.slane %v2967_v57, %v2052_v17 }
 0xf69   :  { %v1906_v25 = vmul.f32 %v1902_v59, %v1902_v59 }
 0xf6a   :  { %v1905_v26 = vmul.f32 %v1897_v24, %v1897_v24 }
 0xf6b   :  { %v1908_v28 = vmul.f32 %v1906_v25, %v1902_v59 }
 0xf6c   :  { %v1907_v61 = vmul.f32 %v1905_v26, %v1897_v24  ;;  %v2059_v26 = vrot.slane %v2967_v57, %v2058_v18 }
 0xf6d   :  { %v1910_v29 = vmul.f32 0.044715, %v1908_v28 }
 0xf6e   :  { %v1909_v30 = vmul.f32 0.044715, %v1907_v61 }
 0xf6f   :  { %v1912_v31 = vadd.f32 %v1910_v29, %v1902_v59 }
 0xf70   :  { %v1911_v58 = vadd.f32 %v1909_v30, %v1897_v24 }
 0xf71   :  { %v1914_v6 = vmul.f32 0.7978846, %v1912_v31  ;;  %v2069_v31 = vrot.slane %v2989_v7, %v2052_v17 }
 0xf72   :  { %v1913_v5 = vmul.f32 0.7978846, %v1911_v58 }
 0xf73   :  { %2750 = vtanh.f32 %v1914_v6 }
 0xf74   :  { %2752 = vtanh.f32 %v1913_v5 }
 0xf7d   :  { %v2751_v32 = vpop.eup %2750 }
 0xf7e   :  { %v2753_v33 = vpop.eup %2752  ;;  %v1918_v34 = vadd.f32 1.0, %v2751_v32 }
 0xf7f   :  { %v1917_v35 = vadd.f32 1.0, %v2753_v33 }
 0xf80   :  { %v1920_v36 = vmul.f32 0.5, %v1918_v34 }
 0xf81   :  { %v1919_v37 = vmul.f32 0.5, %v1917_v35 }
 0xf82   :  { %v1922_v38 = vmul.f32 %v1920_v36, %v1902_v59 }
 0xf83   :  { %v1921_v15 = vmul.f32 %v1919_v37, %v1897_v24 }
 0xf85   :  { %2591 = vmatprep.mubr.msk.f32.mxu0 %vm77_vm0, %v1921_v15 }
 0xf86   :  { %2592 = vmatmul.mubr.msk.f32.vlgmr.msra.gmra.mrb[18].mxu0 %vm77_vm0, %v1922_v38 }
0x1059   :  { %v2593_v42 = vpop.f32.mrb[18].mxu0 }
0x105a   :  { %v2013_v43 = vadd.f32 %v2593_v42, %v1934_v40  ;;  %v2007_v44 = vpop.f32.mrb[19].mxu0 }
0x105b   :  { %v2008_v21 = vadd.f32 %v2007_v44, %v1934_v40 }
0x105c   :  { %v2017_v45 = vadd.f32 %v2013_v43, %v1815_v1 }
0x105d   :  { %v2016_v46 = vadd.f32 %v2008_v21, %v1814_v0 }
0x105e   :  { %v2021_v47 = vsel %vm161_vm3, %v2017_v45, 0.0  ;;  %v2027_v27 = vmul.f32 %v2017_v45, %v2017_v45 }
0x105f   :  { %2022 = vadd.xlane.f32.xlu1 %v2021_v47  ;;  %v2018_v48 = vsel %vm161_vm3, %v2016_v46, 0.0  ;;  %v2026_v49 = vmul.f32 %v2016_v46, %v2016_v46 }
0x1060   :  { %2019 = vadd.xlane.f32.xlu0 %v2018_v48  ;;  %v2031_v12 = vsel %vm161_vm3, %v2027_v27, 0.0 }
0x1061   :  { %v2028_v11 = vsel %vm161_vm3, %v2026_v49, 0.0 }
0x1063   :  { %2032 = vadd.xlane.f32.xlu1 %v2031_v12 }
0x1064   :  { %2029 = vadd.xlane.f32.xlu0 %v2028_v11 }
0x10ec   :  { %v2023_v54 = vpop.xlane.xlu1 %2022 }
0x10ed   :  { %v2025_v56 = vmul.f32 0.03125, %v2023_v54  ;;  %v2020_v60 = vpop.xlane.xlu0 %2019  ;;  %v2216_v54 = vld [vmem:[%s3276_s9 + $0x18] sm:$0xff] }
0x10ee   :  { %v2024_v62 = vmul.f32 0.03125, %v2020_v60 }
0x10ef   :  { %v2037_v0 = vmul.f32 %v2025_v56, %v2025_v56  ;;  %v2043_v19 = vsub.f32 %v2017_v45, %v2025_v56  ;;  %v2684_v56 = vpack.c.bf16 %v2216_v54, %v2215_v53 }
0x10f0   :  { %v2033_v63 = vpop.xlane.xlu1 %2032  ;;  %v2036_v3 = vmul.f32 %v2024_v62, %v2024_v62  ;;  %v2042_v59 = vsub.f32 %v2016_v46, %v2024_v62 }
0x10f1   :  { %v2035_v1 = vmul.f32 0.03125, %v2033_v63  ;;  %v2030_v2 = vpop.xlane.xlu0 %2029 }
0x10f2   :  { %v2034_v4 = vmul.f32 0.03125, %v2030_v2 }
0x10f3   :  { %v2039_v8 = vsub.f32 %v2035_v1, %v2037_v0 }
0x10f4   :  { %v2038_v9 = vsub.f32 %v2034_v4, %v2036_v3 }
0x10f5   :  { %v2041_v10 = vmax.f32 %v2039_v8, 0.0 }
0x10f6   :  { %v2040_v13 = vmax.f32 %v2038_v9, 0.0 }
0x10f7   :  { %v2045_v14 = vadd.f32 1e-12, %v2041_v10 }
0x10f8   :  { %v2044_v16 = vadd.f32 1e-12, %v2040_v13 }
0x10f9   :  { %2754 = vrsqrt.f32 %v2045_v14 }
0x10fa   :  { %2756 = vrsqrt.f32 %v2044_v16 }
0x1103   :  { %v2755_v22 = vpop.eup %2754 }
0x1104   :  { %v2757_v23 = vpop.eup %2756  ;;  %v2049_v24 = vmul.f32 %v2755_v22, %v2043_v19  ;;  %v2209_v22 = vsub.s32 7, %v2961_v55 }
0x1105   :  { %v2048_v25 = vmul.f32 %v2757_v23, %v2042_v59  ;;  %v2766_v23 = vld [vmem:[%s3270_s3] sm:$0xff] }
0x1106   :  { %v2055_v28 = vmul.f32 %v2053_v20, %v2049_v24 }
0x1107   :  { %v2054_v61 = vmul.f32 %v2053_v20, %v2048_v25  ;;  %v2203_v20 = vsub.s32 6, %v2961_v55 }
0x1108   :  { %v2061_v30 = vadd.f32 %v2059_v26, %v2055_v28 }
0x1109   :  { %v2060_v29 = vadd.f32 %v2059_v26, %v2054_v61  ;;  %v2204_v24 = vrot.slane %v2766_v23, %v2203_v20 }
0x110b   :  { %2602 = vmatprep.mubr.msk.f32.mxu1 %vm161_vm3, %v2060_v29 }
0x110c   :  { %2603 = vmatmul.mubr.msk.f32.vlgmr.msra.gmra.mrb[22].mxu1 %vm161_vm3, %v2061_v30  ;;  %v2210_v30 = vrot.slane %v2766_v23, %v2209_v22 }
0x110d   :  { %2683 = vmatpush3.bf16.msra.mxu1 %v2680_v52 }
0x110e   :  { %2685 = vmatprep.subr.bf16.mxu1 %v2684_v56 }
0x1111   :  { %2687 = vmatpush3.bf16.msra.mxu1 %v2684_v56 }
0x11df   :  { %v2604_v58 = vpop.f32.mrb[22].mxu1 }
0x11e0   :  { %v2148_v6 = vadd.f32 %v2604_v58, %v2069_v31  ;;  %v2142_v5 = vpop.f32.mrb[23].mxu1 }
0x11e1   :  { %v2143_v32 = vadd.f32 %v2142_v5, %v2069_v31 }
0x11e2   :  { %v2152_v33 = vmul.f32 %v2148_v6, %v2148_v6 }
0x11e3   :  { %v2151_v34 = vmul.f32 %v2143_v32, %v2143_v32 }
0x11e4   :  { %v2154_v35 = vmul.f32 %v2152_v33, %v2148_v6 }
0x11e5   :  { %v2153_v36 = vmul.f32 %v2151_v34, %v2143_v32 }
0x11e6   :  { %v2156_v37 = vmul.f32 0.044715, %v2154_v35 }
0x11e7   :  { %v2155_v57 = vmul.f32 0.044715, %v2153_v36 }
0x11e8   :  { %v2158_v15 = vadd.f32 %v2156_v37, %v2148_v6 }
0x11e9   :  { %v2157_v38 = vadd.f32 %v2155_v57, %v2143_v32 }
0x11ea   :  { %v2160_v40 = vmul.f32 0.7978846, %v2158_v15 }
0x11eb   :  { %v2159_v42 = vmul.f32 0.7978846, %v2157_v38 }
0x11ec   :  { %2758 = vtanh.f32 %v2160_v40 }
0x11ed   :  { %2760 = vtanh.f32 %v2159_v42 }
0x11f6   :  { %v2759_v43 = vpop.eup %2758 }
0x11f7   :  { %v2761_v44 = vpop.eup %2760  ;;  %v2164_v21 = vadd.f32 1.0, %v2759_v43 }
0x11f8   :  { %v2163_v7 = vadd.f32 1.0, %v2761_v44 }
0x11f9   :  { %v2166_v45 = vmul.f32 0.5, %v2164_v21 }
0x11fa   :  { %v2165_v46 = vmul.f32 0.5, %v2163_v7 }
0x11fb   :  { %v2168_v47 = vmul.f32 %v2166_v45, %v2148_v6 }
0x11fc   :  { %v2167_v27 = vmul.f32 %v2165_v46, %v2143_v32  ;;  %v2767_v32 = vld [vmem:[%s3270_s3 + $0x8] sm:$0xff] }
0x11fd   :  { %v2172_v48 = vsel %vm161_vm3, %v2168_v47, 0.0  ;;  %v2178_v49 = vmul.f32 %v2168_v47, %v2168_v47  ;;  %v2220_v33 = vrot.slane %v2767_v32, %v2058_v18 }
0x11fe   :  { %2173 = vadd.xlane.f32.xlu1 %v2172_v48  ;;  %v2169_v12 = vsel %vm161_vm3, %v2167_v27, 0.0  ;;  %v2177_v11 = vmul.f32 %v2167_v27, %v2167_v27 }
0x11ff   :  { %2170 = vadd.xlane.f32.xlu0 %v2169_v12  ;;  %v2182_v50 = vsel %vm161_vm3, %v2178_v49, 0.0 }
0x1200   :  { %v2179_v39 = vsel %vm161_vm3, %v2177_v11, 0.0 }
0x1202   :  { %2183 = vadd.xlane.f32.xlu1 %v2182_v50 }
0x1203   :  { %2180 = vadd.xlane.f32.xlu0 %v2179_v39 }
0x128b   :  { %v2174_v60 = vpop.xlane.xlu1 %2173 }
0x128c   :  { %v2176_v62 = vmul.f32 0.03125, %v2174_v60  ;;  %v2171_v63 = vpop.xlane.xlu0 %2170 }
0x128d   :  { %v2175_v0 = vmul.f32 0.03125, %v2171_v63 }
0x128e   :  { %v2188_v2 = vmul.f32 %v2176_v62, %v2176_v62  ;;  %v2194_v59 = vsub.f32 %v2168_v47, %v2176_v62 }
0x128f   :  { %v2184_v1 = vpop.xlane.xlu1 %2183  ;;  %v2187_v8 = vmul.f32 %v2175_v0, %v2175_v0  ;;  %v2193_v26 = vsub.f32 %v2167_v27, %v2175_v0 }
0x1290   :  { %v2186_v3 = vmul.f32 0.03125, %v2184_v1  ;;  %v2181_v4 = vpop.xlane.xlu0 %2180 }
0x1291   :  { %v2185_v9 = vmul.f32 0.03125, %v2181_v4 }
0x1292   :  { %v2190_v10 = vsub.f32 %v2186_v3, %v2188_v2 }
0x1293   :  { %v2189_v13 = vsub.f32 %v2185_v9, %v2187_v8 }
0x1294   :  { %v2192_v14 = vmax.f32 %v2190_v10, 0.0 }
0x1295   :  { %v2191_v16 = vmax.f32 %v2189_v13, 0.0 }
0x1296   :  { %v2196_v17 = vadd.f32 1e-12, %v2192_v14 }
0x1297   :  { %v2195_v19 = vadd.f32 1e-12, %v2191_v16 }
0x1298   :  { %2762 = vrsqrt.f32 %v2196_v17 }
0x1299   :  { %2764 = vrsqrt.f32 %v2195_v19 }
0x12a2   :  { %v2763_v25 = vpop.eup %2762 }
0x12a3   :  { %v2765_v28 = vpop.eup %2764  ;;  %v2200_v61 = vmul.f32 %v2763_v25, %v2194_v59 }
0x12a4   :  { %v2199_v29 = vmul.f32 %v2765_v28, %v2193_v26 }
0x12a5   :  { %v2206_v31 = vmul.f32 %v2204_v24, %v2200_v61 }
0x12a6   :  { %v2205_v58 = vmul.f32 %v2204_v24, %v2199_v29 }
0x12a7   :  { %v2212_v5 = vadd.f32 %v2210_v30, %v2206_v31 }
0x12a8   :  { %v2211_v6 = vadd.f32 %v2210_v30, %v2205_v58 }
0x12aa   :  { %2613 = vmatprep.mubr.msk.f32.mxu1 %vm161_vm3, %v2211_v6 }
0x12ab   :  { %2614 = vmatmul.mubr.msk.f32.vlgmr.msra.gmra.mrb[24].mxu1 %vm161_vm3, %v2212_v5 }
0x137e   :  { %v2615_v34 = vpop.f32.mrb[24].mxu1 }
0x137f   :  { %v2299_v35 = vadd.f32 %v2615_v34, %v2220_v33  ;;  %v2293_v36 = vpop.f32.mrb[25].mxu1 }
0x1380   :  { %v2294_v37 = vadd.f32 %v2293_v36, %v2220_v33 }
0x1381   :  { %2303 = vst [vmem:[#allocation5 + $0x8] sm:$0xff] %v2299_v35 }
0x1382   :  { %2302 = vst [vmem:[#allocation5] sm:$0xff] %v2294_v37 }
0x1383   :  { %2801 = shalt.err (!%p2798_p12)
}
0x1384   :  { %s2802_s11 = scalar_lea.hbm %s3277_s10, 256 }
0x1385   :  { %p2803_p13 = scmp.ne.s32.totalorder %s3277_s10, %s2802_s11  ;;  %p2806_p0 = scmp.lt.u32.totalorder %s2802_s11, %s3277_s10 }
0x1387   :  { %p2808_p1 = pnand %p2806_p0, %p2803_p13 }
0x1389   :  { %2811 = shalt.err (!%p2808_p1)
}
0x138a   :  { %s2836_s4 = smov 128  }
0x138b   :  { %2315 = dma.vmem_to_hbm [thread:$0]  %s2310_s29, 256, %s3277_s10, [#allocation4], %s2836_s4, %s2836_s4, %s2833_s27  }
0x138c   :  { %2814 = dma.done.wait [#allocation4], 256  }
0x138d   :  { %2815 = vsyncadd [#allocation4], 4294967040 }
0x138e   :  { %2319 = vsyncpa [#allocation3], 1 }
0x138f   :  { %2320 = vsyncpa [#allocation4], 1 }

</bundles_post_ra>
